<compile_context>
chip_gen: v7x
topology: tpu7x:2x2x1
jax: 0.10.0
libtpu: 0.0.40
codegen_flags: <defaults>
</compile_context>

<pallas_src>
import functools

import numpy as np
import jax
import jax.numpy as jnp
from jax import lax
from jax.experimental import pallas as pl
from jax.experimental.pallas import tpu as pltpu

_BN_EPS = 1e-5
_NUM_CB = 3   # checkerboard couplings per Scale
_NUM_CH = 3   # channel-mask couplings per Scale
_NUM_COUP = _NUM_CB + _NUM_CH


def _realnvp_scale_kernel(x_ref, cbs_ref, cbt_ref, wch_ref, bch_ref,
                          gamma_ref, beta_ref,
                          y_ref, row_ref, var_ref,
                          xbuf, rowbuf, *, C, B, HW2):
    n_half = C // 2
    half = B * HW2                 # lanes per checkerboard-parity half
    BHW = 2 * half
    inv_n = 1.0 / float(BHW)

    s_idx = pl.program_id(0)

    # ---- step 0: load x into the persistent VMEM carry --------------------
    @pl.when(s_idx == 0)
    def _():
        xbuf[...] = x_ref[...]
        rowbuf[...] = jnp.zeros_like(rowbuf)

    def flow_bn(k):
        # Training-mode BN over batch+spatial (= lane axis), single data pass
        # (var = E[x^2] - mean^2).  The log-det term is finished in the
        # wrapper from the exported variance (no EUP logs in-kernel).
        xv = xbuf[...]                                            # (C, BHW)
        mean = jnp.sum(xv, axis=1, keepdims=True) * inv_n         # (C, 1)
        var = jnp.sum(xv * xv, axis=1, keepdims=True) * inv_n - mean * mean
        xbuf[...] = ((xv - mean) * lax.rsqrt(var + _BN_EPS)
                     * gamma_ref[0, k] + beta_ref[0, k])
        var_ref[0, k] = var

    def scale_body(orient):
        # ---- 3 checkerboard couplings (mask-free, tanh/exp-free) -----------
        # s/t are per-channel constants at the changed pixels (1x1-conv s/t
        # net sees zeros there); changed pixels are one contiguous lane slice.
        for i in range(_NUM_CB):
            chg = 1 - (orient + i) % 2
            lo = chg * half
            xbuf[:, lo:lo + half] = (xbuf[:, lo:lo + half] * cbs_ref[0, i]
                                     + cbt_ref[0, i])
        flow_bn(0)

        # ---- 3 channel-mask couplings (static sublane slices, fused s/t) ---
        for i in range(_NUM_CH):
            keep_low = ((orient + i) % 2 == 0)
            k_lo = 0 if keep_low else n_half
            c_lo = n_half if keep_low else 0
            w = wch_ref[0, i]                      # (C, n_half) fused [Ws; Wt]
            b = bch_ref[0, i]                      # (C, 1)      fused [bs; bt]
            xk = xbuf[k_lo:k_lo + n_half, :]       # (n_half, BHW) kept channels
            if n_half <= 16:
                # Degenerate matmul (K = C/2): VPU broadcast-FMA instead of a
                # <1%-occupancy MXU tile (avoids MXU push/drain latency).
                st = b
                for kk in range(n_half):
                    st = st + w[:, kk:kk + 1] * xk[kk:kk + 1, :]
            else:
                st = jnp.dot(w, xk, preferred_element_type=jnp.float32) + b
            s_val = jnp.tanh(st[:n_half])          # (n_half, BHW)
            t_val = st[n_half:]
            xbuf[c_lo:c_lo + n_half, :] = (xbuf[c_lo:c_lo + n_half, :]
                                           * jnp.exp(s_val) + t_val)
            # sublane-only reduce; per-sample lane reduction happens in the
            # wrapper (lane-dense row output, no in-kernel batch loop).
            rowbuf[...] = rowbuf[...] + jnp.sum(s_val, axis=0, keepdims=True)
        flow_bn(1)

    orient_bit = s_idx % 2

    @pl.when(orient_bit == 0)
    def _():
        scale_body(0)

    @pl.when(orient_bit == 1)
    def _():
        scale_body(1)

    # ---- last step: flush persistent carries to the lane-dense outputs ----
    @pl.when(s_idx == pl.num_programs(0) - 1)
    def _():
        y_ref[...] = xbuf[...]
        row_ref[...] = rowbuf[...]


def _vmem_limit_bytes():
    # Generation-aware scoped-VMEM cap: ~3/4 of physical per-core VMEM
    # (48 MiB on v7x's 64 MiB/TC, 96 MiB on v5e/v6e's 128 MiB); conservative
    # 64 MiB fallback if the query is unavailable.
    try:
        info = pltpu.get_tpu_info()
        cap = int(getattr(info, "vmem_capacity_bytes", 64 * 1024 * 1024))
    except Exception:
        cap = 64 * 1024 * 1024
    return max(32 * 1024 * 1024, (cap // 4) * 3)


def _run_block(x2, cb_scale, cb_shift, w_ch, b_ch, gamma, beta, B, C, H, W):
    S = cb_scale.shape[0]
    HW2 = (H * W) // 2
    BHW = x2.shape[1]
    n_half = C // 2
    kernel = functools.partial(_realnvp_scale_kernel, C=C, B=B, HW2=HW2)

    full2 = lambda s: (0, 0)            # carried / write-once full blocks
    lead4 = lambda s: (s, 0, 0, 0)      # per-scale parameter blocks

    y2, row, var = pl.pallas_call(
        kernel,
        grid=(S,),
        in_specs=[
            pl.BlockSpec((C, BHW), full2),                 # x (read at step 0)
            pl.BlockSpec((1, _NUM_CB, C, 1), lead4),       # cb exp(tanh(b_s))
            pl.BlockSpec((1, _NUM_CB, C, 1), lead4),       # cb b_t
            pl.BlockSpec((1, _NUM_CH, C, n_half), lead4),  # fused [Ws; Wt]
            pl.BlockSpec((1, _NUM_CH, C, 1), lead4),       # fused [bs; bt]
            pl.BlockSpec((1, 2, C, 1), lead4),             # BN gamma
            pl.BlockSpec((1, 2, C, 1), lead4),             # BN beta
        ],
        out_specs=[
            pl.BlockSpec((C, BHW), full2),                 # y
            pl.BlockSpec((1, BHW), full2),                 # channel log-det row
            pl.BlockSpec((1, 2, C, 1), lead4),             # BN variances
        ],
        out_shape=[
            jax.ShapeDtypeStruct((C, BHW), jnp.float32),
            jax.ShapeDtypeStruct((1, BHW), jnp.float32),
            jax.ShapeDtypeStruct((S, 2, C, 1), jnp.float32),
        ],
        scratch_shapes=[
            pltpu.VMEM((C, BHW), jnp.float32),             # persistent x carry
            pltpu.VMEM((1, BHW), jnp.float32),             # persistent row acc
        ],
        compiler_params=pltpu.CompilerParams(
            dimension_semantics=("arbitrary",),            # scales are serial
            vmem_limit_bytes=_vmem_limit_bytes()),
    )(x2, cb_scale, cb_shift, w_ch, b_ch, gamma, beta)
    return y2, row, var


def _pack_params(params, C):
    """Wrapper-side parameter preprocessing (tiny arrays, negligible cost)."""
    n_half = C // 2
    cbs, cbt, wch, bch, gms, bts = [], [], [], [], [], []
    cb_tanh_sum = jnp.float32(0.0)
    for s_idx, (w_all, b_all, gamma, beta) in enumerate(params):
        orient = s_idx % 2
        cbs_i, cbt_i, wch_i, bch_i = [], [], [], []
        for i in range(_NUM_CB):
            tb = jnp.tanh(b_all[i, :C])
            cbs_i.append(jnp.exp(tb))            # per-channel exp(tanh(b_s))
            cbt_i.append(b_all[i, C:])           # per-channel b_t
            cb_tanh_sum = cb_tanh_sum + jnp.sum(tb)
        for i in range(_NUM_CH):
            keep_low = ((orient + i) % 2 == 0)
            k_lo = 0 if keep_low else n_half
            c_lo = n_half if keep_low else 0
            w = w_all[_NUM_CB + i]
            b = b_all[_NUM_CB + i]
            w_s = w[c_lo:c_lo + n_half, k_lo:k_lo + n_half]
            w_t = w[C + c_lo:C + c_lo + n_half, k_lo:k_lo + n_half]
            wch_i.append(jnp.concatenate([w_s, w_t], axis=0))      # (C, n_half)
            bch_i.append(jnp.concatenate([b[c_lo:c_lo + n_half],
                                          b[C + c_lo:C + c_lo + n_half]]))
        cbs.append(jnp.stack(cbs_i))
        cbt.append(jnp.stack(cbt_i))
        wch.append(jnp.stack(wch_i))
        bch.append(jnp.stack(bch_i))
        gms.append(gamma)
        bts.append(beta)
    cb_scale = jnp.stack(cbs)[..., None]       # (S, 3, C, 1)
    cb_shift = jnp.stack(cbt)[..., None]       # (S, 3, C, 1)
    w_ch = jnp.stack(wch)                      # (S, 3, C, C//2)
    b_ch = jnp.stack(bch)[..., None]           # (S, 3, C, 1)
    gamma_all = jnp.stack(gms)                 # (S, 2, C)
    beta_all = jnp.stack(bts)                  # (S, 2, C)
    return cb_scale, cb_shift, w_ch, b_ch, gamma_all, beta_all, cb_tanh_sum


def _squeeze(x):
    # (B, C, H, W) -> (B, 4C, H/2, W/2) space-to-depth (RealNVP convention).
    B, C, H, W = x.shape
    x = x.reshape(B, C, H // 2, 2, W // 2, 2)
    x = x.transpose(0, 1, 3, 5, 2, 4)
    return x.reshape(B, C * 4, H // 2, W // 2)


def init_realnvp_block_params(key, num_step_of_flow, base_input_shape):
    C = base_input_shape[0]
    params = []
    for _ in range(num_step_of_flow):
        key, k = jax.random.split(key)
        w_all = jax.random.normal(k, (_NUM_COUP, 2 * C, C), jnp.float32) * 0.05
        b_all = jnp.zeros((_NUM_COUP, 2 * C), jnp.float32)
        gamma = jnp.ones((2, C), jnp.float32)
        beta = jnp.zeros((2, C), jnp.float32)
        params.append((w_all, b_all, gamma, beta))
    return params


def realnvp_block_forward(x, params):
    """x: (B, C, H, W) NCHW float32. Returns (z, total_logdet) with
    z: (B, 4C, H/2, W/2), total_logdet: (B,)."""
    B, C, H, W = x.shape
    assert C % 2 == 0, "even channel count required"  # TODO(synk): odd C
    assert H % 2 == 0 and W % 2 == 0
    HW = H * W
    HW2 = HW // 2
    S = len(params)

    # Checkerboard de-interleave (wrapper-side layout plumbing): lane order is
    # (parity, batch, pixel-within-parity) so every coupling in the kernel is
    # a static, mask-free slice.
    pos = np.arange(HW)
    parity = ((pos // W) + (pos % W)) % 2
    order = np.argsort(parity, kind="stable").astype(np.int32)
    inv_order = np.argsort(order).astype(np.int32)

    xf = jnp.transpose(x.astype(jnp.float32), (1, 0, 2, 3)).reshape(C, B, HW)
    xf = jnp.take(xf, jnp.asarray(order), axis=2)
    x2 = xf.reshape(C, B, 2, HW2).transpose(0, 2, 1, 3).reshape(C, B * HW)

    (cb_scale, cb_shift, w_ch, b_ch,
     gamma_all, beta_all, cb_tanh_sum) = _pack_params(params, C)

    y2, row, var = _run_block(x2, cb_scale, cb_shift, w_ch, b_ch,
                              gamma_all[..., None], beta_all[..., None],
                              B, C, H, W)

    # undo de-interleave + squeeze
    yf = y2.reshape(C, 2, B, HW2).transpose(0, 2, 1, 3).reshape(C, B, HW)
    yf = jnp.take(yf, jnp.asarray(inv_order), axis=2)
    y = jnp.transpose(yf.reshape(C, B, H, W), (1, 0, 2, 3))
    z = _squeeze(y)

    # log-det epilogue (kept out of the kernel): per-sample channel-coupling
    # sums + checkerboard bias term (identical per sample) + flow-BN term.
    ld_ch = jnp.sum(row.reshape(2, B, HW2), axis=(0, 2))            # (B,)
    ld_cb = jnp.float32(HW2) * cb_tanh_sum                           # scalar
    var_sc = var.reshape(S, 2, C)
    ld_bn = jnp.float32(HW) * (jnp.sum(jnp.log(jnp.abs(gamma_all)))
                               - 0.5 * jnp.sum(jnp.log(var_sc + _BN_EPS)))
    total_logdet = ld_ch + ld_cb + ld_bn
    return z, total_logdet


def _reference_forward(x, params):
    """Pure-JAX reference with the same coupling / flow-BN semantics."""
    B, C, H, W = x.shape
    HW = H * W
    xr = x.reshape(B, C, HW).astype(jnp.float32)
    total_ld = jnp.zeros((B,), jnp.float32)
    hh = jnp.arange(H)[:, None]
    ww = jnp.arange(W)[None, :]
    for s_idx, (w_all, b_all, gamma, beta) in enumerate(params):
        orient = s_idx % 2
        m_cb = (((hh + ww + orient) % 2) == 0).astype(jnp.float32).reshape(1, 1, HW)
        ch = (jnp.arange(C) < C // 2).astype(jnp.float32)
        if orient == 1:
            ch = 1.0 - ch
        m_ch = ch.reshape(1, C, 1)

        def coupling(xv, ld, mask, idx):
            w = w_all[idx]
            b = b_all[idx]
            xm = xv * mask
            st = jnp.einsum('oc,bcs->bos', w, xm) + b[None, :, None]
            s = jnp.tanh(st[:, :C]) * (1.0 - mask)
            t = st[:, C:] * (1.0 - mask)
            y = xm + (1.0 - mask) * (xv * jnp.exp(s) + t)
            return y, ld + jnp.sum(s, axis=(1, 2))

        def flow_bn(xv, ld, k):
            g = gamma[k]
            bt = beta[k]
            mean = jnp.mean(xv, axis=(0, 2), keepdims=True)
            var = jnp.mean((xv - mean) ** 2, axis=(0, 2), keepdims=True)
            y = ((xv - mean) * lax.rsqrt(var + _BN_EPS)
                 * g[None, :, None] + bt[None, :, None])
            bld = HW * jnp.sum(jnp.log(jnp.abs(g))
                               - 0.5 * jnp.log(var[0, :, 0] + _BN_EPS))
            return y, ld + bld

        for i in range(_NUM_CB):
            m = m_cb if i % 2 == 0 else 1.0 - m_cb
            xr, total_ld = coupling(xr, total_ld, m, i)
        xr, total_ld = flow_bn(xr, total_ld, 0)
        for i in range(_NUM_CH):
            m = m_ch if i % 2 == 0 else 1.0 - m_ch
            xr, total_ld = coupling(xr, total_ld, m, _NUM_CB + i)
        xr, total_ld = flow_bn(xr, total_ld, 1)
    z = _squeeze(xr.reshape(B, C, H, W))
    return z, total_ld


if __name__ == "__main__":
    key = jax.random.PRNGKey(0)
    kx, kp = jax.random.split(key)
    B, C, H, W = 2, 4, 16, 16
    x = jax.random.normal(kx, (B, C, H, W), jnp.float32)
    params = init_realnvp_block_params(kp, num_step_of_flow=2,
                                       base_input_shape=[C, H, W])

    z, logdet = realnvp_block_forward(x, params)
    jax.block_until_ready((z, logdet))
    assert z.shape == (B, 4 * C, H // 2, W // 2), z.shape
    assert logdet.shape == (B,), logdet.shape
    assert bool(jnp.all(jnp.isfinite(z))) and bool(jnp.all(jnp.isfinite(logdet)))

    z_ref, ld_ref = _reference_forward(x, params)
    assert bool(jnp.max(jnp.abs(z - z_ref)) < 5e-3), "z mismatch vs reference"
    ld_tol = 1e-2 + 1e-3 * float(jnp.max(jnp.abs(ld_ref)))
    assert bool(jnp.max(jnp.abs(logdet - ld_ref)) < ld_tol), "logdet mismatch"

    print("KERNEL_OK")
</pallas_src>

<mosaic_0001>
module attributes {stable_mosaic.version = 11 : i64} {
  func.func @_realnvp_scale_kernel(%arg0: i32, %arg1: memref<4x512xf32, #tpu.memory_space<vmem>>, %arg2: memref<1x3x4x1xf32, #tpu.memory_space<vmem>>, %arg3: memref<1x3x4x1xf32, #tpu.memory_space<vmem>>, %arg4: memref<1x3x4x2xf32, #tpu.memory_space<vmem>>, %arg5: memref<1x3x4x1xf32, #tpu.memory_space<vmem>>, %arg6: memref<1x2x4x1xf32, #tpu.memory_space<vmem>>, %arg7: memref<1x2x4x1xf32, #tpu.memory_space<vmem>>, %arg8: memref<4x512xf32, #tpu.memory_space<vmem>>, %arg9: memref<1x512xf32, #tpu.memory_space<vmem>>, %arg10: memref<1x2x4x1xf32, #tpu.memory_space<vmem>>, %arg11: memref<4x512xf32, #tpu.memory_space<vmem>>, %arg12: memref<1x512xf32, #tpu.memory_space<vmem>>) attributes {dimension_semantics = [#tpu.dimension_semantics<arbitrary>], iteration_bounds = array<i64: 2>, scalar_prefetch = 0 : i64, scratch_operands = 2 : i64, tpu.core_type = #tpu.core_type<tc>, window_params = [{pipeline_mode = #tpu.pipeline_mode<synchronous>, transform_indices = @transform_0, window_bounds = array<i64: 4, 512>}, {transform_indices = @transform_1, window_bounds = array<i64: 1, 3, 4, 1>}, {transform_indices = @transform_2, window_bounds = array<i64: 1, 3, 4, 1>}, {transform_indices = @transform_3, window_bounds = array<i64: 1, 3, 4, 2>}, {transform_indices = @transform_4, window_bounds = array<i64: 1, 3, 4, 1>}, {transform_indices = @transform_5, window_bounds = array<i64: 1, 2, 4, 1>}, {transform_indices = @transform_6, window_bounds = array<i64: 1, 2, 4, 1>}, {pipeline_mode = #tpu.pipeline_mode<synchronous>, transform_indices = @transform_7, window_bounds = array<i64: 4, 512>}, {pipeline_mode = #tpu.pipeline_mode<synchronous>, transform_indices = @transform_8, window_bounds = array<i64: 1, 512>}, {transform_indices = @transform_9, window_bounds = array<i64: 1, 2, 4, 1>}]} {
    %c0_i32 = arith.constant 0 : i32
    %0 = arith.cmpi eq, %arg0, %c0_i32 : i32
    %1 = arith.extui %0 : i1 to i32
    %c0_i32_0 = arith.constant 0 : i32
    %2 = arith.cmpi ne, %1, %c0_i32_0 : i32
    scf.if %2 {
      %c0 = arith.constant 0 : index
      %c0_11 = arith.constant 0 : index
      %22 = vector.load %arg1[%c0, %c0_11] : memref<4x512xf32, #tpu.memory_space<vmem>>, vector<4x512xf32>
      %c0_12 = arith.constant 0 : index
      %c0_13 = arith.constant 0 : index
      %23 = vector.load %arg11[%c0_12, %c0_13] : memref<4x512xf32, #tpu.memory_space<vmem>>, vector<4x512xf32>
      tpu.vector_store %arg11[%c0_12, %c0_13], %22 {strides = array<i32>} : memref<4x512xf32, #tpu.memory_space<vmem>>, vector<4x512xf32>,
      %cst = arith.constant 0.000000e+00 : f32
      %24 = vector.broadcast %cst : f32 to vector<1x512xf32>
      %c0_14 = arith.constant 0 : index
      %c0_15 = arith.constant 0 : index
      %25 = vector.load %arg12[%c0_14, %c0_15] : memref<1x512xf32, #tpu.memory_space<vmem>>, vector<1x512xf32>
      tpu.vector_store %arg12[%c0_14, %c0_15], %24 {strides = array<i32>} : memref<1x512xf32, #tpu.memory_space<vmem>>, vector<1x512xf32>,
    } else {
    }
    %c2_i32 = arith.constant 2 : i32
    %c0_i32_1 = arith.constant 0 : i32
    %3 = arith.cmpi eq, %c2_i32, %c0_i32_1 : i32
    %c1_i32 = arith.constant 1 : i32
    %4 = arith.select %3, %c1_i32, %c2_i32 : i32
    %5 = arith.remsi %arg0, %4 : i32
    %c0_i32_2 = arith.constant 0 : i32
    %6 = arith.cmpi ne, %5, %c0_i32_2 : i32
    %c0_i32_3 = arith.constant 0 : i32
    %7 = arith.cmpi slt, %5, %c0_i32_3 : i32
    %c0_i32_4 = arith.constant 0 : i32
    %8 = arith.cmpi slt, %4, %c0_i32_4 : i32
    %9 = arith.xori %7, %8 : i1
    %10 = arith.andi %9, %6 : i1
    %11 = arith.addi %5, %4 : i32
    %12 = arith.select %10, %11, %5 : i32
    %c0_i32_5 = arith.constant 0 : i32
    %13 = arith.cmpi eq, %12, %c0_i32_5 : i32
    %14 = arith.extui %13 : i1 to i32
    %c0_i32_6 = arith.constant 0 : i32
    %15 = arith.cmpi ne, %14, %c0_i32_6 : i32
    scf.if %15 {
      %c0 = arith.constant 0 : index
      %c256 = arith.constant 256 : index
      %22 = vector.load %arg11[%c0, %c256] : memref<4x512xf32, #tpu.memory_space<vmem>>, vector<4x256xf32>
      %c0_11 = arith.constant 0 : index
      %c0_12 = arith.constant 0 : index
      %c0_13 = arith.constant 0 : index
      %c0_14 = arith.constant 0 : index
      %23 = vector.load %arg2[%c0_11, %c0_12, %c0_13, %c0_14] : memref<1x3x4x1xf32, #tpu.memory_space<vmem>>, vector<1x1x4x1xf32>
      %24 = vector.shape_cast %23 : vector<1x1x4x1xf32> to vector<4x1xf32>
      %25 = vector.broadcast %24 : vector<4x1xf32> to vector<4x256xf32>
      %26 = arith.mulf %22, %25 : vector<4x256xf32>
      %c0_15 = arith.constant 0 : index
      %c0_16 = arith.constant 0 : index
      %c0_17 = arith.constant 0 : index
      %c0_18 = arith.constant 0 : index
      %27 = vector.load %arg3[%c0_15, %c0_16, %c0_17, %c0_18] : memref<1x3x4x1xf32, #tpu.memory_space<vmem>>, vector<1x1x4x1xf32>
      %28 = vector.shape_cast %27 : vector<1x1x4x1xf32> to vector<4x1xf32>
      %29 = vector.broadcast %28 : vector<4x1xf32> to vector<4x256xf32>
      %30 = arith.addf %26, %29 : vector<4x256xf32>
      %c0_19 = arith.constant 0 : index
      %c256_20 = arith.constant 256 : index
      %31 = vector.load %arg11[%c0_19, %c256_20] : memref<4x512xf32, #tpu.memory_space<vmem>>, vector<4x256xf32>
      tpu.vector_store %arg11[%c0_19, %c256_20], %30 {strides = array<i32>} : memref<4x512xf32, #tpu.memory_space<vmem>>, vector<4x256xf32>,
      %c0_21 = arith.constant 0 : index
      %c0_22 = arith.constant 0 : index
      %32 = vector.load %arg11[%c0_21, %c0_22] : memref<4x512xf32, #tpu.memory_space<vmem>>, vector<4x256xf32>
      %c0_23 = arith.constant 0 : index
      %c1 = arith.constant 1 : index
      %c0_24 = arith.constant 0 : index
      %c0_25 = arith.constant 0 : index
      %33 = vector.load %arg2[%c0_23, %c1, %c0_24, %c0_25] : memref<1x3x4x1xf32, #tpu.memory_space<vmem>>, vector<1x1x4x1xf32>
      %34 = vector.shape_cast %33 : vector<1x1x4x1xf32> to vector<4x1xf32>
      %35 = vector.broadcast %34 : vector<4x1xf32> to vector<4x256xf32>
      %36 = arith.mulf %32, %35 : vector<4x256xf32>
      %c0_26 = arith.constant 0 : index
      %c1_27 = arith.constant 1 : index
      %c0_28 = arith.constant 0 : index
      %c0_29 = arith.constant 0 : index
      %37 = vector.load %arg3[%c0_26, %c1_27, %c0_28, %c0_29] : memref<1x3x4x1xf32, #tpu.memory_space<vmem>>, vector<1x1x4x1xf32>
      %38 = vector.shape_cast %37 : vector<1x1x4x1xf32> to vector<4x1xf32>
      %39 = vector.broadcast %38 : vector<4x1xf32> to vector<4x256xf32>
      %40 = arith.addf %36, %39 : vector<4x256xf32>
      %c0_30 = arith.constant 0 : index
      %c0_31 = arith.constant 0 : index
      %41 = vector.load %arg11[%c0_30, %c0_31] : memref<4x512xf32, #tpu.memory_space<vmem>>, vector<4x256xf32>
      tpu.vector_store %arg11[%c0_30, %c0_31], %40 {strides = array<i32>} : memref<4x512xf32, #tpu.memory_space<vmem>>, vector<4x256xf32>,
      %c0_32 = arith.constant 0 : index
      %c256_33 = arith.constant 256 : index
      %42 = vector.load %arg11[%c0_32, %c256_33] : memref<4x512xf32, #tpu.memory_space<vmem>>, vector<4x256xf32>
      %c0_34 = arith.constant 0 : index
      %c2 = arith.constant 2 : index
      %c0_35 = arith.constant 0 : index
      %c0_36 = arith.constant 0 : index
      %43 = vector.load %arg2[%c0_34, %c2, %c0_35, %c0_36] : memref<1x3x4x1xf32, #tpu.memory_space<vmem>>, vector<1x1x4x1xf32>
      %44 = vector.shape_cast %43 : vector<1x1x4x1xf32> to vector<4x1xf32>
      %45 = vector.broadcast %44 : vector<4x1xf32> to vector<4x256xf32>
      %46 = arith.mulf %42, %45 : vector<4x256xf32>
      %c0_37 = arith.constant 0 : index
      %c2_38 = arith.constant 2 : index
      %c0_39 = arith.constant 0 : index
      %c0_40 = arith.constant 0 : index
      %47 = vector.load %arg3[%c0_37, %c2_38, %c0_39, %c0_40] : memref<1x3x4x1xf32, #tpu.memory_space<vmem>>, vector<1x1x4x1xf32>
      %48 = vector.shape_cast %47 : vector<1x1x4x1xf32> to vector<4x1xf32>
      %49 = vector.broadcast %48 : vector<4x1xf32> to vector<4x256xf32>
      %50 = arith.addf %46, %49 : vector<4x256xf32>
      %c0_41 = arith.constant 0 : index
      %c256_42 = arith.constant 256 : index
      %51 = vector.load %arg11[%c0_41, %c256_42] : memref<4x512xf32, #tpu.memory_space<vmem>>, vector<4x256xf32>
      tpu.vector_store %arg11[%c0_41, %c256_42], %50 {strides = array<i32>} : memref<4x512xf32, #tpu.memory_space<vmem>>, vector<4x256xf32>,
      %c0_43 = arith.constant 0 : index
      %c0_44 = arith.constant 0 : index
      %52 = vector.load %arg11[%c0_43, %c0_44] : memref<4x512xf32, #tpu.memory_space<vmem>>, vector<4x512xf32>
      %cst = arith.constant dense<0.000000e+00> : vector<4xf32>
      %53 = vector.multi_reduction <add>, %52, %cst [1] : vector<4x512xf32> to vector<4xf32>
      %54 = vector.shape_cast %53 : vector<4xf32> to vector<4x1xf32>
      %cst_45 = arith.constant 0.001953125 : f32
      %55 = vector.broadcast %cst_45 : f32 to vector<4x1xf32>
      %56 = arith.mulf %54, %55 : vector<4x1xf32>
      %57 = arith.mulf %52, %52 : vector<4x512xf32>
      %cst_46 = arith.constant dense<0.000000e+00> : vector<4xf32>
      %58 = vector.multi_reduction <add>, %57, %cst_46 [1] : vector<4x512xf32> to vector<4xf32>
      %59 = vector.shape_cast %58 : vector<4xf32> to vector<4x1xf32>
      %cst_47 = arith.constant 0.001953125 : f32
      %60 = vector.broadcast %cst_47 : f32 to vector<4x1xf32>
      %61 = arith.mulf %59, %60 : vector<4x1xf32>
      %62 = arith.mulf %56, %56 : vector<4x1xf32>
      %63 = arith.subf %61, %62 : vector<4x1xf32>
      %64 = vector.broadcast %56 : vector<4x1xf32> to vector<4x512xf32>
      %65 = arith.subf %52, %64 : vector<4x512xf32>
      %cst_48 = arith.constant 9.99999974E-6 : f32
      %66 = vector.broadcast %cst_48 : f32 to vector<4x1xf32>
      %67 = arith.addf %63, %66 : vector<4x1xf32>
      %68 = math.rsqrt %67 : vector<4x1xf32>
      %69 = vector.broadcast %68 : vector<4x1xf32> to vector<4x512xf32>
      %70 = arith.mulf %65, %69 : vector<4x512xf32>
      %c0_49 = arith.constant 0 : index
      %c0_50 = arith.constant 0 : index
      %c0_51 = arith.constant 0 : index
      %c0_52 = arith.constant 0 : index
      %71 = vector.load %arg6[%c0_49, %c0_50, %c0_51, %c0_52] : memref<1x2x4x1xf32, #tpu.memory_space<vmem>>, vector<1x1x4x1xf32>
      %72 = vector.shape_cast %71 : vector<1x1x4x1xf32> to vector<4x1xf32>
      %73 = vector.broadcast %72 : vector<4x1xf32> to vector<4x512xf32>
      %74 = arith.mulf %70, %73 : vector<4x512xf32>
      %c0_53 = arith.constant 0 : index
      %c0_54 = arith.constant 0 : index
      %c0_55 = arith.constant 0 : index
      %c0_56 = arith.constant 0 : index
      %75 = vector.load %arg7[%c0_53, %c0_54, %c0_55, %c0_56] : memref<1x2x4x1xf32, #tpu.memory_space<vmem>>, vector<1x1x4x1xf32>
      %76 = vector.shape_cast %75 : vector<1x1x4x1xf32> to vector<4x1xf32>
      %77 = vector.broadcast %76 : vector<4x1xf32> to vector<4x512xf32>
      %78 = arith.addf %74, %77 : vector<4x512xf32>
      %c0_57 = arith.constant 0 : index
      %c0_58 = arith.constant 0 : index
      %79 = vector.load %arg11[%c0_57, %c0_58] : memref<4x512xf32, #tpu.memory_space<vmem>>, vector<4x512xf32>
      tpu.vector_store %arg11[%c0_57, %c0_58], %78 {strides = array<i32>} : memref<4x512xf32, #tpu.memory_space<vmem>>, vector<4x512xf32>,
      %c0_59 = arith.constant 0 : index
      %c0_60 = arith.constant 0 : index
      %c0_61 = arith.constant 0 : index
      %c0_62 = arith.constant 0 : index
      %80 = vector.load %arg10[%c0_59, %c0_60, %c0_61, %c0_62] : memref<1x2x4x1xf32, #tpu.memory_space<vmem>>, vector<1x1x4x1xf32>
      %81 = vector.shape_cast %80 : vector<1x1x4x1xf32> to vector<4x1xf32>
      %82 = vector.shape_cast %63 : vector<4x1xf32> to vector<1x1x4x1xf32>
      tpu.vector_store %arg10[%c0_59, %c0_60, %c0_61, %c0_62], %82 {strides = array<i32>} : memref<1x2x4x1xf32, #tpu.memory_space<vmem>>, vector<1x1x4x1xf32>,
      %c0_63 = arith.constant 0 : index
      %c0_64 = arith.constant 0 : index
      %c0_65 = arith.constant 0 : index
      %c0_66 = arith.constant 0 : index
      %83 = vector.load %arg4[%c0_63, %c0_64, %c0_65, %c0_66] : memref<1x3x4x2xf32, #tpu.memory_space<vmem>>, vector<1x1x4x2xf32>
      %84 = vector.shape_cast %83 : vector<1x1x4x2xf32> to vector<4x2xf32>
      %c0_67 = arith.constant 0 : index
      %c0_68 = arith.constant 0 : index
      %c0_69 = arith.constant 0 : index
      %c0_70 = arith.constant 0 : index
      %85 = vector.load %arg5[%c0_67, %c0_68, %c0_69, %c0_70] : memref<1x3x4x1xf32, #tpu.memory_space<vmem>>, vector<1x1x4x1xf32>
      %86 = vector.shape_cast %85 : vector<1x1x4x1xf32> to vector<4x1xf32>
      %c0_71 = arith.constant 0 : index
      %c0_72 = arith.constant 0 : index
      %87 = vector.load %arg11[%c0_71, %c0_72] : memref<4x512xf32, #tpu.memory_space<vmem>>, vector<2x512xf32>
      %88 = vector.extract_strided_slice %84 {offsets = [0, 0], sizes = [4, 1], strides = [1, 1]} : vector<4x2xf32> to vector<4x1xf32>
      %89 = vector.extract_strided_slice %87 {offsets = [0, 0], sizes = [1, 512], strides = [1, 1]} : vector<2x512xf32> to vector<1x512xf32>
      %90 = vector.broadcast %88 : vector<4x1xf32> to vector<4x512xf32>
      %91 = vector.broadcast %89 : vector<1x512xf32> to vector<4x512xf32>
      %92 = arith.mulf %90, %91 : vector<4x512xf32>
      %93 = vector.broadcast %86 : vector<4x1xf32> to vector<4x512xf32>
      %94 = arith.addf %93, %92 : vector<4x512xf32>
      %95 = vector.extract_strided_slice %84 {offsets = [0, 1], sizes = [4, 1], strides = [1, 1]} : vector<4x2xf32> to vector<4x1xf32>
      %96 = vector.extract_strided_slice %87 {offsets = [1, 0], sizes = [1, 512], strides = [1, 1]} : vector<2x512xf32> to vector<1x512xf32>
      %97 = vector.broadcast %95 : vector<4x1xf32> to vector<4x512xf32>
      %98 = vector.broadcast %96 : vector<1x512xf32> to vector<4x512xf32>
      %99 = arith.mulf %97, %98 : vector<4x512xf32>
      %100 = arith.addf %94, %99 : vector<4x512xf32>
      %101 = vector.extract_strided_slice %100 {offsets = [0, 0], sizes = [2, 512], strides = [1, 1]} : vector<4x512xf32> to vector<2x512xf32>
      %102 = math.tanh %101 : vector<2x512xf32>
      %103 = vector.extract_strided_slice %100 {offsets = [2, 0], sizes = [2, 512], strides = [1, 1]} : vector<4x512xf32> to vector<2x512xf32>
      %c2_73 = arith.constant 2 : index
      %c0_74 = arith.constant 0 : index
      %104 = vector.load %arg11[%c2_73, %c0_74] : memref<4x512xf32, #tpu.memory_space<vmem>>, vector<2x512xf32>
      %105 = math.exp %102 : vector<2x512xf32>
      %106 = arith.mulf %104, %105 : vector<2x512xf32>
      %107 = arith.addf %106, %103 : vector<2x512xf32>
      %c2_75 = arith.constant 2 : index
      %c0_76 = arith.constant 0 : index
      %108 = vector.load %arg11[%c2_75, %c0_76] : memref<4x512xf32, #tpu.memory_space<vmem>>, vector<2x512xf32>
      tpu.vector_store %arg11[%c2_75, %c0_76], %107 {strides = array<i32>} : memref<4x512xf32, #tpu.memory_space<vmem>>, vector<2x512xf32>,
      %c0_77 = arith.constant 0 : index
      %c0_78 = arith.constant 0 : index
      %109 = vector.load %arg12[%c0_77, %c0_78] : memref<1x512xf32, #tpu.memory_space<vmem>>, vector<1x512xf32>
      %cst_79 = arith.constant dense<0.000000e+00> : vector<512xf32>
      %110 = vector.multi_reduction <add>, %102, %cst_79 [0] : vector<2x512xf32> to vector<512xf32>
      %111 = vector.shape_cast %110 : vector<512xf32> to vector<1x512xf32>
      %112 = arith.addf %109, %111 : vector<1x512xf32>
      %c0_80 = arith.constant 0 : index
      %c0_81 = arith.constant 0 : index
      %113 = vector.load %arg12[%c0_80, %c0_81] : memref<1x512xf32, #tpu.memory_space<vmem>>, vector<1x512xf32>
      tpu.vector_store %arg12[%c0_80, %c0_81], %112 {strides = array<i32>} : memref<1x512xf32, #tpu.memory_space<vmem>>, vector<1x512xf32>,
      %c0_82 = arith.constant 0 : index
      %c1_83 = arith.constant 1 : index
      %c0_84 = arith.constant 0 : index
      %c0_85 = arith.constant 0 : index
      %114 = vector.load %arg4[%c0_82, %c1_83, %c0_84, %c0_85] : memref<1x3x4x2xf32, #tpu.memory_space<vmem>>, vector<1x1x4x2xf32>
      %115 = vector.shape_cast %114 : vector<1x1x4x2xf32> to vector<4x2xf32>
      %c0_86 = arith.constant 0 : index
      %c1_87 = arith.constant 1 : index
      %c0_88 = arith.constant 0 : index
      %c0_89 = arith.constant 0 : index
      %116 = vector.load %arg5[%c0_86, %c1_87, %c0_88, %c0_89] : memref<1x3x4x1xf32, #tpu.memory_space<vmem>>, vector<1x1x4x1xf32>
      %117 = vector.shape_cast %116 : vector<1x1x4x1xf32> to vector<4x1xf32>
      %c2_90 = arith.constant 2 : index
      %c0_91 = arith.constant 0 : index
      %118 = vector.load %arg11[%c2_90, %c0_91] : memref<4x512xf32, #tpu.memory_space<vmem>>, vector<2x512xf32>
      %119 = vector.extract_strided_slice %115 {offsets = [0, 0], sizes = [4, 1], strides = [1, 1]} : vector<4x2xf32> to vector<4x1xf32>
      %120 = vector.extract_strided_slice %118 {offsets = [0, 0], sizes = [1, 512], strides = [1, 1]} : vector<2x512xf32> to vector<1x512xf32>
      %121 = vector.broadcast %119 : vector<4x1xf32> to vector<4x512xf32>
      %122 = vector.broadcast %120 : vector<1x512xf32> to vector<4x512xf32>
      %123 = arith.mulf %121, %122 : vector<4x512xf32>
      %124 = vector.broadcast %117 : vector<4x1xf32> to vector<4x512xf32>
      %125 = arith.addf %124, %123 : vector<4x512xf32>
      %126 = vector.extract_strided_slice %115 {offsets = [0, 1], sizes = [4, 1], strides = [1, 1]} : vector<4x2xf32> to vector<4x1xf32>
      %127 = vector.extract_strided_slice %118 {offsets = [1, 0], sizes = [1, 512], strides = [1, 1]} : vector<2x512xf32> to vector<1x512xf32>
      %128 = vector.broadcast %126 : vector<4x1xf32> to vector<4x512xf32>
      %129 = vector.broadcast %127 : vector<1x512xf32> to vector<4x512xf32>
      %130 = arith.mulf %128, %129 : vector<4x512xf32>
      %131 = arith.addf %125, %130 : vector<4x512xf32>
      %132 = vector.extract_strided_slice %131 {offsets = [0, 0], sizes = [2, 512], strides = [1, 1]} : vector<4x512xf32> to vector<2x512xf32>
      %133 = math.tanh %132 : vector<2x512xf32>
      %134 = vector.extract_strided_slice %131 {offsets = [2, 0], sizes = [2, 512], strides = [1, 1]} : vector<4x512xf32> to vector<2x512xf32>
      %c0_92 = arith.constant 0 : index
      %c0_93 = arith.constant 0 : index
      %135 = vector.load %arg11[%c0_92, %c0_93] : memref<4x512xf32, #tpu.memory_space<vmem>>, vector<2x512xf32>
      %136 = math.exp %133 : vector<2x512xf32>
      %137 = arith.mulf %135, %136 : vector<2x512xf32>
      %138 = arith.addf %137, %134 : vector<2x512xf32>
      %c0_94 = arith.constant 0 : index
      %c0_95 = arith.constant 0 : index
      %139 = vector.load %arg11[%c0_94, %c0_95] : memref<4x512xf32, #tpu.memory_space<vmem>>, vector<2x512xf32>
      tpu.vector_store %arg11[%c0_94, %c0_95], %138 {strides = array<i32>} : memref<4x512xf32, #tpu.memory_space<vmem>>, vector<2x512xf32>,
      %c0_96 = arith.constant 0 : index
      %c0_97 = arith.constant 0 : index
      %140 = vector.load %arg12[%c0_96, %c0_97] : memref<1x512xf32, #tpu.memory_space<vmem>>, vector<1x512xf32>
      %cst_98 = arith.constant dense<0.000000e+00> : vector<512xf32>
      %141 = vector.multi_reduction <add>, %133, %cst_98 [0] : vector<2x512xf32> to vector<512xf32>
      %142 = vector.shape_cast %141 : vector<512xf32> to vector<1x512xf32>
      %143 = arith.addf %140, %142 : vector<1x512xf32>
      %c0_99 = arith.constant 0 : index
      %c0_100 = arith.constant 0 : index
      %144 = vector.load %arg12[%c0_99, %c0_100] : memref<1x512xf32, #tpu.memory_space<vmem>>, vector<1x512xf32>
      tpu.vector_store %arg12[%c0_99, %c0_100], %143 {strides = array<i32>} : memref<1x512xf32, #tpu.memory_space<vmem>>, vector<1x512xf32>,
      %c0_101 = arith.constant 0 : index
      %c2_102 = arith.constant 2 : index
      %c0_103 = arith.constant 0 : index
      %c0_104 = arith.constant 0 : index
      %145 = vector.load %arg4[%c0_101, %c2_102, %c0_103, %c0_104] : memref<1x3x4x2xf32, #tpu.memory_space<vmem>>, vector<1x1x4x2xf32>
      %146 = vector.shape_cast %145 : vector<1x1x4x2xf32> to vector<4x2xf32>
      %c0_105 = arith.constant 0 : index
      %c2_106 = arith.constant 2 : index
      %c0_107 = arith.constant 0 : index
      %c0_108 = arith.constant 0 : index
      %147 = vector.load %arg5[%c0_105, %c2_106, %c0_107, %c0_108] : memref<1x3x4x1xf32, #tpu.memory_space<vmem>>, vector<1x1x4x1xf32>
      %148 = vector.shape_cast %147 : vector<1x1x4x1xf32> to vector<4x1xf32>
      %c0_109 = arith.constant 0 : index
      %c0_110 = arith.constant 0 : index
      %149 = vector.load %arg11[%c0_109, %c0_110] : memref<4x512xf32, #tpu.memory_space<vmem>>, vector<2x512xf32>
      %150 = vector.extract_strided_slice %146 {offsets = [0, 0], sizes = [4, 1], strides = [1, 1]} : vector<4x2xf32> to vector<4x1xf32>
      %151 = vector.extract_strided_slice %149 {offsets = [0, 0], sizes = [1, 512], strides = [1, 1]} : vector<2x512xf32> to vector<1x512xf32>
      %152 = vector.broadcast %150 : vector<4x1xf32> to vector<4x512xf32>
      %153 = vector.broadcast %151 : vector<1x512xf32> to vector<4x512xf32>
      %154 = arith.mulf %152, %153 : vector<4x512xf32>
      %155 = vector.broadcast %148 : vector<4x1xf32> to vector<4x512xf32>
      %156 = arith.addf %155, %154 : vector<4x512xf32>
      %157 = vector.extract_strided_slice %146 {offsets = [0, 1], sizes = [4, 1], strides = [1, 1]} : vector<4x2xf32> to vector<4x1xf32>
      %158 = vector.extract_strided_slice %149 {offsets = [1, 0], sizes = [1, 512], strides = [1, 1]} : vector<2x512xf32> to vector<1x512xf32>
      %159 = vector.broadcast %157 : vector<4x1xf32> to vector<4x512xf32>
      %160 = vector.broadcast %158 : vector<1x512xf32> to vector<4x512xf32>
      %161 = arith.mulf %159, %160 : vector<4x512xf32>
      %162 = arith.addf %156, %161 : vector<4x512xf32>
      %163 = vector.extract_strided_slice %162 {offsets = [0, 0], sizes = [2, 512], strides = [1, 1]} : vector<4x512xf32> to vector<2x512xf32>
      %164 = math.tanh %163 : vector<2x512xf32>
      %165 = vector.extract_strided_slice %162 {offsets = [2, 0], sizes = [2, 512], strides = [1, 1]} : vector<4x512xf32> to vector<2x512xf32>
      %c2_111 = arith.constant 2 : index
      %c0_112 = arith.constant 0 : index
      %166 = vector.load %arg11[%c2_111, %c0_112] : memref<4x512xf32, #tpu.memory_space<vmem>>, vector<2x512xf32>
      %167 = math.exp %164 : vector<2x512xf32>
      %168 = arith.mulf %166, %167 : vector<2x512xf32>
      %169 = arith.addf %168, %165 : vector<2x512xf32>
      %c2_113 = arith.constant 2 : index
      %c0_114 = arith.constant 0 : index
      %170 = vector.load %arg11[%c2_113, %c0_114] : memref<4x512xf32, #tpu.memory_space<vmem>>, vector<2x512xf32>
      tpu.vector_store %arg11[%c2_113, %c0_114], %169 {strides = array<i32>} : memref<4x512xf32, #tpu.memory_space<vmem>>, vector<2x512xf32>,
      %c0_115 = arith.constant 0 : index
      %c0_116 = arith.constant 0 : index
      %171 = vector.load %arg12[%c0_115, %c0_116] : memref<1x512xf32, #tpu.memory_space<vmem>>, vector<1x512xf32>
      %cst_117 = arith.constant dense<0.000000e+00> : vector<512xf32>
      %172 = vector.multi_reduction <add>, %164, %cst_117 [0] : vector<2x512xf32> to vector<512xf32>
      %173 = vector.shape_cast %172 : vector<512xf32> to vector<1x512xf32>
      %174 = arith.addf %171, %173 : vector<1x512xf32>
      %c0_118 = arith.constant 0 : index
      %c0_119 = arith.constant 0 : index
      %175 = vector.load %arg12[%c0_118, %c0_119] : memref<1x512xf32, #tpu.memory_space<vmem>>, vector<1x512xf32>
      tpu.vector_store %arg12[%c0_118, %c0_119], %174 {strides = array<i32>} : memref<1x512xf32, #tpu.memory_space<vmem>>, vector<1x512xf32>,
      %c0_120 = arith.constant 0 : index
      %c0_121 = arith.constant 0 : index
      %176 = vector.load %arg11[%c0_120, %c0_121] : memref<4x512xf32, #tpu.memory_space<vmem>>, vector<4x512xf32>
      %cst_122 = arith.constant dense<0.000000e+00> : vector<4xf32>
      %177 = vector.multi_reduction <add>, %176, %cst_122 [1] : vector<4x512xf32> to vector<4xf32>
      %178 = vector.shape_cast %177 : vector<4xf32> to vector<4x1xf32>
      %cst_123 = arith.constant 0.001953125 : f32
      %179 = vector.broadcast %cst_123 : f32 to vector<4x1xf32>
      %180 = arith.mulf %178, %179 : vector<4x1xf32>
      %181 = arith.mulf %176, %176 : vector<4x512xf32>
      %cst_124 = arith.constant dense<0.000000e+00> : vector<4xf32>
      %182 = vector.multi_reduction <add>, %181, %cst_124 [1] : vector<4x512xf32> to vector<4xf32>
      %183 = vector.shape_cast %182 : vector<4xf32> to vector<4x1xf32>
      %cst_125 = arith.constant 0.001953125 : f32
      %184 = vector.broadcast %cst_125 : f32 to vector<4x1xf32>
      %185 = arith.mulf %183, %184 : vector<4x1xf32>
      %186 = arith.mulf %180, %180 : vector<4x1xf32>
      %187 = arith.subf %185, %186 : vector<4x1xf32>
      %188 = vector.broadcast %180 : vector<4x1xf32> to vector<4x512xf32>
      %189 = arith.subf %176, %188 : vector<4x512xf32>
      %cst_126 = arith.constant 9.99999974E-6 : f32
      %190 = vector.broadcast %cst_126 : f32 to vector<4x1xf32>
      %191 = arith.addf %187, %190 : vector<4x1xf32>
      %192 = math.rsqrt %191 : vector<4x1xf32>
      %193 = vector.broadcast %192 : vector<4x1xf32> to vector<4x512xf32>
      %194 = arith.mulf %189, %193 : vector<4x512xf32>
      %c0_127 = arith.constant 0 : index
      %c1_128 = arith.constant 1 : index
      %c0_129 = arith.constant 0 : index
      %c0_130 = arith.constant 0 : index
      %195 = vector.load %arg6[%c0_127, %c1_128, %c0_129, %c0_130] : memref<1x2x4x1xf32, #tpu.memory_space<vmem>>, vector<1x1x4x1xf32>
      %196 = vector.shape_cast %195 : vector<1x1x4x1xf32> to vector<4x1xf32>
      %197 = vector.broadcast %196 : vector<4x1xf32> to vector<4x512xf32>
      %198 = arith.mulf %194, %197 : vector<4x512xf32>
      %c0_131 = arith.constant 0 : index
      %c1_132 = arith.constant 1 : index
      %c0_133 = arith.constant 0 : index
      %c0_134 = arith.constant 0 : index
      %199 = vector.load %arg7[%c0_131, %c1_132, %c0_133, %c0_134] : memref<1x2x4x1xf32, #tpu.memory_space<vmem>>, vector<1x1x4x1xf32>
      %200 = vector.shape_cast %199 : vector<1x1x4x1xf32> to vector<4x1xf32>
      %201 = vector.broadcast %200 : vector<4x1xf32> to vector<4x512xf32>
      %202 = arith.addf %198, %201 : vector<4x512xf32>
      %c0_135 = arith.constant 0 : index
      %c0_136 = arith.constant 0 : index
      %203 = vector.load %arg11[%c0_135, %c0_136] : memref<4x512xf32, #tpu.memory_space<vmem>>, vector<4x512xf32>
      tpu.vector_store %arg11[%c0_135, %c0_136], %202 {strides = array<i32>} : memref<4x512xf32, #tpu.memory_space<vmem>>, vector<4x512xf32>,
      %c0_137 = arith.constant 0 : index
      %c1_138 = arith.constant 1 : index
      %c0_139 = arith.constant 0 : index
      %c0_140 = arith.constant 0 : index
      %204 = vector.load %arg10[%c0_137, %c1_138, %c0_139, %c0_140] : memref<1x2x4x1xf32, #tpu.memory_space<vmem>>, vector<1x1x4x1xf32>
      %205 = vector.shape_cast %204 : vector<1x1x4x1xf32> to vector<4x1xf32>
      %206 = vector.shape_cast %187 : vector<4x1xf32> to vector<1x1x4x1xf32>
      tpu.vector_store %arg10[%c0_137, %c1_138, %c0_139, %c0_140], %206 {strides = array<i32>} : memref<1x2x4x1xf32, #tpu.memory_space<vmem>>, vector<1x1x4x1xf32>,
    } else {
    }
    %c1_i32_7 = arith.constant 1 : i32
    %16 = arith.cmpi eq, %12, %c1_i32_7 : i32
    %17 = arith.extui %16 : i1 to i32
    %c0_i32_8 = arith.constant 0 : i32
    %18 = arith.cmpi ne, %17, %c0_i32_8 : i32
    scf.if %18 {
      %c0 = arith.constant 0 : index
      %c0_11 = arith.constant 0 : index
      %22 = vector.load %arg11[%c0, %c0_11] : memref<4x512xf32, #tpu.memory_space<vmem>>, vector<4x256xf32>
      %c0_12 = arith.constant 0 : index
      %c0_13 = arith.constant 0 : index
      %c0_14 = arith.constant 0 : index
      %c0_15 = arith.constant 0 : index
      %23 = vector.load %arg2[%c0_12, %c0_13, %c0_14, %c0_15] : memref<1x3x4x1xf32, #tpu.memory_space<vmem>>, vector<1x1x4x1xf32>
      %24 = vector.shape_cast %23 : vector<1x1x4x1xf32> to vector<4x1xf32>
      %25 = vector.broadcast %24 : vector<4x1xf32> to vector<4x256xf32>
      %26 = arith.mulf %22, %25 : vector<4x256xf32>
      %c0_16 = arith.constant 0 : index
      %c0_17 = arith.constant 0 : index
      %c0_18 = arith.constant 0 : index
      %c0_19 = arith.constant 0 : index
      %27 = vector.load %arg3[%c0_16, %c0_17, %c0_18, %c0_19] : memref<1x3x4x1xf32, #tpu.memory_space<vmem>>, vector<1x1x4x1xf32>
      %28 = vector.shape_cast %27 : vector<1x1x4x1xf32> to vector<4x1xf32>
      %29 = vector.broadcast %28 : vector<4x1xf32> to vector<4x256xf32>
      %30 = arith.addf %26, %29 : vector<4x256xf32>
      %c0_20 = arith.constant 0 : index
      %c0_21 = arith.constant 0 : index
      %31 = vector.load %arg11[%c0_20, %c0_21] : memref<4x512xf32, #tpu.memory_space<vmem>>, vector<4x256xf32>
      tpu.vector_store %arg11[%c0_20, %c0_21], %30 {strides = array<i32>} : memref<4x512xf32, #tpu.memory_space<vmem>>, vector<4x256xf32>,
      %c0_22 = arith.constant 0 : index
      %c256 = arith.constant 256 : index
      %32 = vector.load %arg11[%c0_22, %c256] : memref<4x512xf32, #tpu.memory_space<vmem>>, vector<4x256xf32>
      %c0_23 = arith.constant 0 : index
      %c1 = arith.constant 1 : index
      %c0_24 = arith.constant 0 : index
      %c0_25 = arith.constant 0 : index
      %33 = vector.load %arg2[%c0_23, %c1, %c0_24, %c0_25] : memref<1x3x4x1xf32, #tpu.memory_space<vmem>>, vector<1x1x4x1xf32>
      %34 = vector.shape_cast %33 : vector<1x1x4x1xf32> to vector<4x1xf32>
      %35 = vector.broadcast %34 : vector<4x1xf32> to vector<4x256xf32>
      %36 = arith.mulf %32, %35 : vector<4x256xf32>
      %c0_26 = arith.constant 0 : index
      %c1_27 = arith.constant 1 : index
      %c0_28 = arith.constant 0 : index
      %c0_29 = arith.constant 0 : index
      %37 = vector.load %arg3[%c0_26, %c1_27, %c0_28, %c0_29] : memref<1x3x4x1xf32, #tpu.memory_space<vmem>>, vector<1x1x4x1xf32>
      %38 = vector.shape_cast %37 : vector<1x1x4x1xf32> to vector<4x1xf32>
      %39 = vector.broadcast %38 : vector<4x1xf32> to vector<4x256xf32>
      %40 = arith.addf %36, %39 : vector<4x256xf32>
      %c0_30 = arith.constant 0 : index
      %c256_31 = arith.constant 256 : index
      %41 = vector.load %arg11[%c0_30, %c256_31] : memref<4x512xf32, #tpu.memory_space<vmem>>, vector<4x256xf32>
      tpu.vector_store %arg11[%c0_30, %c256_31], %40 {strides = array<i32>} : memref<4x512xf32, #tpu.memory_space<vmem>>, vector<4x256xf32>,
      %c0_32 = arith.constant 0 : index
      %c0_33 = arith.constant 0 : index
      %42 = vector.load %arg11[%c0_32, %c0_33] : memref<4x512xf32, #tpu.memory_space<vmem>>, vector<4x256xf32>
      %c0_34 = arith.constant 0 : index
      %c2 = arith.constant 2 : index
      %c0_35 = arith.constant 0 : index
      %c0_36 = arith.constant 0 : index
      %43 = vector.load %arg2[%c0_34, %c2, %c0_35, %c0_36] : memref<1x3x4x1xf32, #tpu.memory_space<vmem>>, vector<1x1x4x1xf32>
      %44 = vector.shape_cast %43 : vector<1x1x4x1xf32> to vector<4x1xf32>
      %45 = vector.broadcast %44 : vector<4x1xf32> to vector<4x256xf32>
      %46 = arith.mulf %42, %45 : vector<4x256xf32>
      %c0_37 = arith.constant 0 : index
      %c2_38 = arith.constant 2 : index
      %c0_39 = arith.constant 0 : index
      %c0_40 = arith.constant 0 : index
      %47 = vector.load %arg3[%c0_37, %c2_38, %c0_39, %c0_40] : memref<1x3x4x1xf32, #tpu.memory_space<vmem>>, vector<1x1x4x1xf32>
      %48 = vector.shape_cast %47 : vector<1x1x4x1xf32> to vector<4x1xf32>
      %49 = vector.broadcast %48 : vector<4x1xf32> to vector<4x256xf32>
      %50 = arith.addf %46, %49 : vector<4x256xf32>
      %c0_41 = arith.constant 0 : index
      %c0_42 = arith.constant 0 : index
      %51 = vector.load %arg11[%c0_41, %c0_42] : memref<4x512xf32, #tpu.memory_space<vmem>>, vector<4x256xf32>
      tpu.vector_store %arg11[%c0_41, %c0_42], %50 {strides = array<i32>} : memref<4x512xf32, #tpu.memory_space<vmem>>, vector<4x256xf32>,
      %c0_43 = arith.constant 0 : index
      %c0_44 = arith.constant 0 : index
      %52 = vector.load %arg11[%c0_43, %c0_44] : memref<4x512xf32, #tpu.memory_space<vmem>>, vector<4x512xf32>
      %cst = arith.constant dense<0.000000e+00> : vector<4xf32>
      %53 = vector.multi_reduction <add>, %52, %cst [1] : vector<4x512xf32> to vector<4xf32>
      %54 = vector.shape_cast %53 : vector<4xf32> to vector<4x1xf32>
      %cst_45 = arith.constant 0.001953125 : f32
      %55 = vector.broadcast %cst_45 : f32 to vector<4x1xf32>
      %56 = arith.mulf %54, %55 : vector<4x1xf32>
      %57 = arith.mulf %52, %52 : vector<4x512xf32>
      %cst_46 = arith.constant dense<0.000000e+00> : vector<4xf32>
      %58 = vector.multi_reduction <add>, %57, %cst_46 [1] : vector<4x512xf32> to vector<4xf32>
      %59 = vector.shape_cast %58 : vector<4xf32> to vector<4x1xf32>
      %cst_47 = arith.constant 0.001953125 : f32
      %60 = vector.broadcast %cst_47 : f32 to vector<4x1xf32>
      %61 = arith.mulf %59, %60 : vector<4x1xf32>
      %62 = arith.mulf %56, %56 : vector<4x1xf32>
      %63 = arith.subf %61, %62 : vector<4x1xf32>
      %64 = vector.broadcast %56 : vector<4x1xf32> to vector<4x512xf32>
      %65 = arith.subf %52, %64 : vector<4x512xf32>
      %cst_48 = arith.constant 9.99999974E-6 : f32
      %66 = vector.broadcast %cst_48 : f32 to vector<4x1xf32>
      %67 = arith.addf %63, %66 : vector<4x1xf32>
      %68 = math.rsqrt %67 : vector<4x1xf32>
      %69 = vector.broadcast %68 : vector<4x1xf32> to vector<4x512xf32>
      %70 = arith.mulf %65, %69 : vector<4x512xf32>
      %c0_49 = arith.constant 0 : index
      %c0_50 = arith.constant 0 : index
      %c0_51 = arith.constant 0 : index
      %c0_52 = arith.constant 0 : index
      %71 = vector.load %arg6[%c0_49, %c0_50, %c0_51, %c0_52] : memref<1x2x4x1xf32, #tpu.memory_space<vmem>>, vector<1x1x4x1xf32>
      %72 = vector.shape_cast %71 : vector<1x1x4x1xf32> to vector<4x1xf32>
      %73 = vector.broadcast %72 : vector<4x1xf32> to vector<4x512xf32>
      %74 = arith.mulf %70, %73 : vector<4x512xf32>
      %c0_53 = arith.constant 0 : index
      %c0_54 = arith.constant 0 : index
      %c0_55 = arith.constant 0 : index
      %c0_56 = arith.constant 0 : index
      %75 = vector.load %arg7[%c0_53, %c0_54, %c0_55, %c0_56] : memref<1x2x4x1xf32, #tpu.memory_space<vmem>>, vector<1x1x4x1xf32>
      %76 = vector.shape_cast %75 : vector<1x1x4x1xf32> to vector<4x1xf32>
      %77 = vector.broadcast %76 : vector<4x1xf32> to vector<4x512xf32>
      %78 = arith.addf %74, %77 : vector<4x512xf32>
      %c0_57 = arith.constant 0 : index
      %c0_58 = arith.constant 0 : index
      %79 = vector.load %arg11[%c0_57, %c0_58] : memref<4x512xf32, #tpu.memory_space<vmem>>, vector<4x512xf32>
      tpu.vector_store %arg11[%c0_57, %c0_58], %78 {strides = array<i32>} : memref<4x512xf32, #tpu.memory_space<vmem>>, vector<4x512xf32>,
      %c0_59 = arith.constant 0 : index
      %c0_60 = arith.constant 0 : index
      %c0_61 = arith.constant 0 : index
      %c0_62 = arith.constant 0 : index
      %80 = vector.load %arg10[%c0_59, %c0_60, %c0_61, %c0_62] : memref<1x2x4x1xf32, #tpu.memory_space<vmem>>, vector<1x1x4x1xf32>
      %81 = vector.shape_cast %80 : vector<1x1x4x1xf32> to vector<4x1xf32>
      %82 = vector.shape_cast %63 : vector<4x1xf32> to vector<1x1x4x1xf32>
      tpu.vector_store %arg10[%c0_59, %c0_60, %c0_61, %c0_62], %82 {strides = array<i32>} : memref<1x2x4x1xf32, #tpu.memory_space<vmem>>, vector<1x1x4x1xf32>,
      %c0_63 = arith.constant 0 : index
      %c0_64 = arith.constant 0 : index
      %c0_65 = arith.constant 0 : index
      %c0_66 = arith.constant 0 : index
      %83 = vector.load %arg4[%c0_63, %c0_64, %c0_65, %c0_66] : memref<1x3x4x2xf32, #tpu.memory_space<vmem>>, vector<1x1x4x2xf32>
      %84 = vector.shape_cast %83 : vector<1x1x4x2xf32> to vector<4x2xf32>
      %c0_67 = arith.constant 0 : index
      %c0_68 = arith.constant 0 : index
      %c0_69 = arith.constant 0 : index
      %c0_70 = arith.constant 0 : index
      %85 = vector.load %arg5[%c0_67, %c0_68, %c0_69, %c0_70] : memref<1x3x4x1xf32, #tpu.memory_space<vmem>>, vector<1x1x4x1xf32>
      %86 = vector.shape_cast %85 : vector<1x1x4x1xf32> to vector<4x1xf32>
      %c2_71 = arith.constant 2 : index
      %c0_72 = arith.constant 0 : index
      %87 = vector.load %arg11[%c2_71, %c0_72] : memref<4x512xf32, #tpu.memory_space<vmem>>, vector<2x512xf32>
      %88 = vector.extract_strided_slice %84 {offsets = [0, 0], sizes = [4, 1], strides = [1, 1]} : vector<4x2xf32> to vector<4x1xf32>
      %89 = vector.extract_strided_slice %87 {offsets = [0, 0], sizes = [1, 512], strides = [1, 1]} : vector<2x512xf32> to vector<1x512xf32>
      %90 = vector.broadcast %88 : vector<4x1xf32> to vector<4x512xf32>
      %91 = vector.broadcast %89 : vector<1x512xf32> to vector<4x512xf32>
      %92 = arith.mulf %90, %91 : vector<4x512xf32>
      %93 = vector.broadcast %86 : vector<4x1xf32> to vector<4x512xf32>
      %94 = arith.addf %93, %92 : vector<4x512xf32>
      %95 = vector.extract_strided_slice %84 {offsets = [0, 1], sizes = [4, 1], strides = [1, 1]} : vector<4x2xf32> to vector<4x1xf32>
      %96 = vector.extract_strided_slice %87 {offsets = [1, 0], sizes = [1, 512], strides = [1, 1]} : vector<2x512xf32> to vector<1x512xf32>
      %97 = vector.broadcast %95 : vector<4x1xf32> to vector<4x512xf32>
      %98 = vector.broadcast %96 : vector<1x512xf32> to vector<4x512xf32>
      %99 = arith.mulf %97, %98 : vector<4x512xf32>
      %100 = arith.addf %94, %99 : vector<4x512xf32>
      %101 = vector.extract_strided_slice %100 {offsets = [0, 0], sizes = [2, 512], strides = [1, 1]} : vector<4x512xf32> to vector<2x512xf32>
      %102 = math.tanh %101 : vector<2x512xf32>
      %103 = vector.extract_strided_slice %100 {offsets = [2, 0], sizes = [2, 512], strides = [1, 1]} : vector<4x512xf32> to vector<2x512xf32>
      %c0_73 = arith.constant 0 : index
      %c0_74 = arith.constant 0 : index
      %104 = vector.load %arg11[%c0_73, %c0_74] : memref<4x512xf32, #tpu.memory_space<vmem>>, vector<2x512xf32>
      %105 = math.exp %102 : vector<2x512xf32>
      %106 = arith.mulf %104, %105 : vector<2x512xf32>
      %107 = arith.addf %106, %103 : vector<2x512xf32>
      %c0_75 = arith.constant 0 : index
      %c0_76 = arith.constant 0 : index
      %108 = vector.load %arg11[%c0_75, %c0_76] : memref<4x512xf32, #tpu.memory_space<vmem>>, vector<2x512xf32>
      tpu.vector_store %arg11[%c0_75, %c0_76], %107 {strides = array<i32>} : memref<4x512xf32, #tpu.memory_space<vmem>>, vector<2x512xf32>,
      %c0_77 = arith.constant 0 : index
      %c0_78 = arith.constant 0 : index
      %109 = vector.load %arg12[%c0_77, %c0_78] : memref<1x512xf32, #tpu.memory_space<vmem>>, vector<1x512xf32>
      %cst_79 = arith.constant dense<0.000000e+00> : vector<512xf32>
      %110 = vector.multi_reduction <add>, %102, %cst_79 [0] : vector<2x512xf32> to vector<512xf32>
      %111 = vector.shape_cast %110 : vector<512xf32> to vector<1x512xf32>
      %112 = arith.addf %109, %111 : vector<1x512xf32>
      %c0_80 = arith.constant 0 : index
      %c0_81 = arith.constant 0 : index
      %113 = vector.load %arg12[%c0_80, %c0_81] : memref<1x512xf32, #tpu.memory_space<vmem>>, vector<1x512xf32>
      tpu.vector_store %arg12[%c0_80, %c0_81], %112 {strides = array<i32>} : memref<1x512xf32, #tpu.memory_space<vmem>>, vector<1x512xf32>,
      %c0_82 = arith.constant 0 : index
      %c1_83 = arith.constant 1 : index
      %c0_84 = arith.constant 0 : index
      %c0_85 = arith.constant 0 : index
      %114 = vector.load %arg4[%c0_82, %c1_83, %c0_84, %c0_85] : memref<1x3x4x2xf32, #tpu.memory_space<vmem>>, vector<1x1x4x2xf32>
      %115 = vector.shape_cast %114 : vector<1x1x4x2xf32> to vector<4x2xf32>
      %c0_86 = arith.constant 0 : index
      %c1_87 = arith.constant 1 : index
      %c0_88 = arith.constant 0 : index
      %c0_89 = arith.constant 0 : index
      %116 = vector.load %arg5[%c0_86, %c1_87, %c0_88, %c0_89] : memref<1x3x4x1xf32, #tpu.memory_space<vmem>>, vector<1x1x4x1xf32>
      %117 = vector.shape_cast %116 : vector<1x1x4x1xf32> to vector<4x1xf32>
      %c0_90 = arith.constant 0 : index
      %c0_91 = arith.constant 0 : index
      %118 = vector.load %arg11[%c0_90, %c0_91] : memref<4x512xf32, #tpu.memory_space<vmem>>, vector<2x512xf32>
      %119 = vector.extract_strided_slice %115 {offsets = [0, 0], sizes = [4, 1], strides = [1, 1]} : vector<4x2xf32> to vector<4x1xf32>
      %120 = vector.extract_strided_slice %118 {offsets = [0, 0], sizes = [1, 512], strides = [1, 1]} : vector<2x512xf32> to vector<1x512xf32>
      %121 = vector.broadcast %119 : vector<4x1xf32> to vector<4x512xf32>
      %122 = vector.broadcast %120 : vector<1x512xf32> to vector<4x512xf32>
      %123 = arith.mulf %121, %122 : vector<4x512xf32>
      %124 = vector.broadcast %117 : vector<4x1xf32> to vector<4x512xf32>
      %125 = arith.addf %124, %123 : vector<4x512xf32>
      %126 = vector.extract_strided_slice %115 {offsets = [0, 1], sizes = [4, 1], strides = [1, 1]} : vector<4x2xf32> to vector<4x1xf32>
      %127 = vector.extract_strided_slice %118 {offsets = [1, 0], sizes = [1, 512], strides = [1, 1]} : vector<2x512xf32> to vector<1x512xf32>
      %128 = vector.broadcast %126 : vector<4x1xf32> to vector<4x512xf32>
      %129 = vector.broadcast %127 : vector<1x512xf32> to vector<4x512xf32>
      %130 = arith.mulf %128, %129 : vector<4x512xf32>
      %131 = arith.addf %125, %130 : vector<4x512xf32>
      %132 = vector.extract_strided_slice %131 {offsets = [0, 0], sizes = [2, 512], strides = [1, 1]} : vector<4x512xf32> to vector<2x512xf32>
      %133 = math.tanh %132 : vector<2x512xf32>
      %134 = vector.extract_strided_slice %131 {offsets = [2, 0], sizes = [2, 512], strides = [1, 1]} : vector<4x512xf32> to vector<2x512xf32>
      %c2_92 = arith.constant 2 : index
      %c0_93 = arith.constant 0 : index
      %135 = vector.load %arg11[%c2_92, %c0_93] : memref<4x512xf32, #tpu.memory_space<vmem>>, vector<2x512xf32>
      %136 = math.exp %133 : vector<2x512xf32>
      %137 = arith.mulf %135, %136 : vector<2x512xf32>
      %138 = arith.addf %137, %134 : vector<2x512xf32>
      %c2_94 = arith.constant 2 : index
      %c0_95 = arith.constant 0 : index
      %139 = vector.load %arg11[%c2_94, %c0_95] : memref<4x512xf32, #tpu.memory_space<vmem>>, vector<2x512xf32>
      tpu.vector_store %arg11[%c2_94, %c0_95], %138 {strides = array<i32>} : memref<4x512xf32, #tpu.memory_space<vmem>>, vector<2x512xf32>,
      %c0_96 = arith.constant 0 : index
      %c0_97 = arith.constant 0 : index
      %140 = vector.load %arg12[%c0_96, %c0_97] : memref<1x512xf32, #tpu.memory_space<vmem>>, vector<1x512xf32>
      %cst_98 = arith.constant dense<0.000000e+00> : vector<512xf32>
      %141 = vector.multi_reduction <add>, %133, %cst_98 [0] : vector<2x512xf32> to vector<512xf32>
      %142 = vector.shape_cast %141 : vector<512xf32> to vector<1x512xf32>
      %143 = arith.addf %140, %142 : vector<1x512xf32>
      %c0_99 = arith.constant 0 : index
      %c0_100 = arith.constant 0 : index
      %144 = vector.load %arg12[%c0_99, %c0_100] : memref<1x512xf32, #tpu.memory_space<vmem>>, vector<1x512xf32>
      tpu.vector_store %arg12[%c0_99, %c0_100], %143 {strides = array<i32>} : memref<1x512xf32, #tpu.memory_space<vmem>>, vector<1x512xf32>,
      %c0_101 = arith.constant 0 : index
      %c2_102 = arith.constant 2 : index
      %c0_103 = arith.constant 0 : index
      %c0_104 = arith.constant 0 : index
      %145 = vector.load %arg4[%c0_101, %c2_102, %c0_103, %c0_104] : memref<1x3x4x2xf32, #tpu.memory_space<vmem>>, vector<1x1x4x2xf32>
      %146 = vector.shape_cast %145 : vector<1x1x4x2xf32> to vector<4x2xf32>
      %c0_105 = arith.constant 0 : index
      %c2_106 = arith.constant 2 : index
      %c0_107 = arith.constant 0 : index
      %c0_108 = arith.constant 0 : index
      %147 = vector.load %arg5[%c0_105, %c2_106, %c0_107, %c0_108] : memref<1x3x4x1xf32, #tpu.memory_space<vmem>>, vector<1x1x4x1xf32>
      %148 = vector.shape_cast %147 : vector<1x1x4x1xf32> to vector<4x1xf32>
      %c2_109 = arith.constant 2 : index
      %c0_110 = arith.constant 0 : index
      %149 = vector.load %arg11[%c2_109, %c0_110] : memref<4x512xf32, #tpu.memory_space<vmem>>, vector<2x512xf32>
      %150 = vector.extract_strided_slice %146 {offsets = [0, 0], sizes = [4, 1], strides = [1, 1]} : vector<4x2xf32> to vector<4x1xf32>
      %151 = vector.extract_strided_slice %149 {offsets = [0, 0], sizes = [1, 512], strides = [1, 1]} : vector<2x512xf32> to vector<1x512xf32>
      %152 = vector.broadcast %150 : vector<4x1xf32> to vector<4x512xf32>
      %153 = vector.broadcast %151 : vector<1x512xf32> to vector<4x512xf32>
      %154 = arith.mulf %152, %153 : vector<4x512xf32>
      %155 = vector.broadcast %148 : vector<4x1xf32> to vector<4x512xf32>
      %156 = arith.addf %155, %154 : vector<4x512xf32>
      %157 = vector.extract_strided_slice %146 {offsets = [0, 1], sizes = [4, 1], strides = [1, 1]} : vector<4x2xf32> to vector<4x1xf32>
      %158 = vector.extract_strided_slice %149 {offsets = [1, 0], sizes = [1, 512], strides = [1, 1]} : vector<2x512xf32> to vector<1x512xf32>
      %159 = vector.broadcast %157 : vector<4x1xf32> to vector<4x512xf32>
      %160 = vector.broadcast %158 : vector<1x512xf32> to vector<4x512xf32>
      %161 = arith.mulf %159, %160 : vector<4x512xf32>
      %162 = arith.addf %156, %161 : vector<4x512xf32>
      %163 = vector.extract_strided_slice %162 {offsets = [0, 0], sizes = [2, 512], strides = [1, 1]} : vector<4x512xf32> to vector<2x512xf32>
      %164 = math.tanh %163 : vector<2x512xf32>
      %165 = vector.extract_strided_slice %162 {offsets = [2, 0], sizes = [2, 512], strides = [1, 1]} : vector<4x512xf32> to vector<2x512xf32>
      %c0_111 = arith.constant 0 : index
      %c0_112 = arith.constant 0 : index
      %166 = vector.load %arg11[%c0_111, %c0_112] : memref<4x512xf32, #tpu.memory_space<vmem>>, vector<2x512xf32>
      %167 = math.exp %164 : vector<2x512xf32>
      %168 = arith.mulf %166, %167 : vector<2x512xf32>
      %169 = arith.addf %168, %165 : vector<2x512xf32>
      %c0_113 = arith.constant 0 : index
      %c0_114 = arith.constant 0 : index
      %170 = vector.load %arg11[%c0_113, %c0_114] : memref<4x512xf32, #tpu.memory_space<vmem>>, vector<2x512xf32>
      tpu.vector_store %arg11[%c0_113, %c0_114], %169 {strides = array<i32>} : memref<4x512xf32, #tpu.memory_space<vmem>>, vector<2x512xf32>,
      %c0_115 = arith.constant 0 : index
      %c0_116 = arith.constant 0 : index
      %171 = vector.load %arg12[%c0_115, %c0_116] : memref<1x512xf32, #tpu.memory_space<vmem>>, vector<1x512xf32>
      %cst_117 = arith.constant dense<0.000000e+00> : vector<512xf32>
      %172 = vector.multi_reduction <add>, %164, %cst_117 [0] : vector<2x512xf32> to vector<512xf32>
      %173 = vector.shape_cast %172 : vector<512xf32> to vector<1x512xf32>
      %174 = arith.addf %171, %173 : vector<1x512xf32>
      %c0_118 = arith.constant 0 : index
      %c0_119 = arith.constant 0 : index
      %175 = vector.load %arg12[%c0_118, %c0_119] : memref<1x512xf32, #tpu.memory_space<vmem>>, vector<1x512xf32>
      tpu.vector_store %arg12[%c0_118, %c0_119], %174 {strides = array<i32>} : memref<1x512xf32, #tpu.memory_space<vmem>>, vector<1x512xf32>,
      %c0_120 = arith.constant 0 : index
      %c0_121 = arith.constant 0 : index
      %176 = vector.load %arg11[%c0_120, %c0_121] : memref<4x512xf32, #tpu.memory_space<vmem>>, vector<4x512xf32>
      %cst_122 = arith.constant dense<0.000000e+00> : vector<4xf32>
      %177 = vector.multi_reduction <add>, %176, %cst_122 [1] : vector<4x512xf32> to vector<4xf32>
      %178 = vector.shape_cast %177 : vector<4xf32> to vector<4x1xf32>
      %cst_123 = arith.constant 0.001953125 : f32
      %179 = vector.broadcast %cst_123 : f32 to vector<4x1xf32>
      %180 = arith.mulf %178, %179 : vector<4x1xf32>
      %181 = arith.mulf %176, %176 : vector<4x512xf32>
      %cst_124 = arith.constant dense<0.000000e+00> : vector<4xf32>
      %182 = vector.multi_reduction <add>, %181, %cst_124 [1] : vector<4x512xf32> to vector<4xf32>
      %183 = vector.shape_cast %182 : vector<4xf32> to vector<4x1xf32>
      %cst_125 = arith.constant 0.001953125 : f32
      %184 = vector.broadcast %cst_125 : f32 to vector<4x1xf32>
      %185 = arith.mulf %183, %184 : vector<4x1xf32>
      %186 = arith.mulf %180, %180 : vector<4x1xf32>
      %187 = arith.subf %185, %186 : vector<4x1xf32>
      %188 = vector.broadcast %180 : vector<4x1xf32> to vector<4x512xf32>
      %189 = arith.subf %176, %188 : vector<4x512xf32>
      %cst_126 = arith.constant 9.99999974E-6 : f32
      %190 = vector.broadcast %cst_126 : f32 to vector<4x1xf32>
      %191 = arith.addf %187, %190 : vector<4x1xf32>
      %192 = math.rsqrt %191 : vector<4x1xf32>
      %193 = vector.broadcast %192 : vector<4x1xf32> to vector<4x512xf32>
      %194 = arith.mulf %189, %193 : vector<4x512xf32>
      %c0_127 = arith.constant 0 : index
      %c1_128 = arith.constant 1 : index
      %c0_129 = arith.constant 0 : index
      %c0_130 = arith.constant 0 : index
      %195 = vector.load %arg6[%c0_127, %c1_128, %c0_129, %c0_130] : memref<1x2x4x1xf32, #tpu.memory_space<vmem>>, vector<1x1x4x1xf32>
      %196 = vector.shape_cast %195 : vector<1x1x4x1xf32> to vector<4x1xf32>
      %197 = vector.broadcast %196 : vector<4x1xf32> to vector<4x512xf32>
      %198 = arith.mulf %194, %197 : vector<4x512xf32>
      %c0_131 = arith.constant 0 : index
      %c1_132 = arith.constant 1 : index
      %c0_133 = arith.constant 0 : index
      %c0_134 = arith.constant 0 : index
      %199 = vector.load %arg7[%c0_131, %c1_132, %c0_133, %c0_134] : memref<1x2x4x1xf32, #tpu.memory_space<vmem>>, vector<1x1x4x1xf32>
      %200 = vector.shape_cast %199 : vector<1x1x4x1xf32> to vector<4x1xf32>
      %201 = vector.broadcast %200 : vector<4x1xf32> to vector<4x512xf32>
      %202 = arith.addf %198, %201 : vector<4x512xf32>
      %c0_135 = arith.constant 0 : index
      %c0_136 = arith.constant 0 : index
      %203 = vector.load %arg11[%c0_135, %c0_136] : memref<4x512xf32, #tpu.memory_space<vmem>>, vector<4x512xf32>
      tpu.vector_store %arg11[%c0_135, %c0_136], %202 {strides = array<i32>} : memref<4x512xf32, #tpu.memory_space<vmem>>, vector<4x512xf32>,
      %c0_137 = arith.constant 0 : index
      %c1_138 = arith.constant 1 : index
      %c0_139 = arith.constant 0 : index
      %c0_140 = arith.constant 0 : index
      %204 = vector.load %arg10[%c0_137, %c1_138, %c0_139, %c0_140] : memref<1x2x4x1xf32, #tpu.memory_space<vmem>>, vector<1x1x4x1xf32>
      %205 = vector.shape_cast %204 : vector<1x1x4x1xf32> to vector<4x1xf32>
      %206 = vector.shape_cast %187 : vector<4x1xf32> to vector<1x1x4x1xf32>
      tpu.vector_store %arg10[%c0_137, %c1_138, %c0_139, %c0_140], %206 {strides = array<i32>} : memref<1x2x4x1xf32, #tpu.memory_space<vmem>>, vector<1x1x4x1xf32>,
    } else {
    }
    %c1_i32_9 = arith.constant 1 : i32
    %19 = arith.cmpi eq, %arg0, %c1_i32_9 : i32
    %20 = arith.extui %19 : i1 to i32
    %c0_i32_10 = arith.constant 0 : i32
    %21 = arith.cmpi ne, %20, %c0_i32_10 : i32
    scf.if %21 {
      %c0 = arith.constant 0 : index
      %c0_11 = arith.constant 0 : index
      %22 = vector.load %arg11[%c0, %c0_11] : memref<4x512xf32, #tpu.memory_space<vmem>>, vector<4x512xf32>
      %c0_12 = arith.constant 0 : index
      %c0_13 = arith.constant 0 : index
      %23 = vector.load %arg8[%c0_12, %c0_13] : memref<4x512xf32, #tpu.memory_space<vmem>>, vector<4x512xf32>
      tpu.vector_store %arg8[%c0_12, %c0_13], %22 {strides = array<i32>} : memref<4x512xf32, #tpu.memory_space<vmem>>, vector<4x512xf32>,
      %c0_14 = arith.constant 0 : index
      %c0_15 = arith.constant 0 : index
      %24 = vector.load %arg12[%c0_14, %c0_15] : memref<1x512xf32, #tpu.memory_space<vmem>>, vector<1x512xf32>
      %c0_16 = arith.constant 0 : index
      %c0_17 = arith.constant 0 : index
      %25 = vector.load %arg9[%c0_16, %c0_17] : memref<1x512xf32, #tpu.memory_space<vmem>>, vector<1x512xf32>
      tpu.vector_store %arg9[%c0_16, %c0_17], %24 {strides = array<i32>} : memref<1x512xf32, #tpu.memory_space<vmem>>, vector<1x512xf32>,
    } else {
    }
    return
  }
  func.func @transform_0(%arg0: i32) -> (i32, i32) {
    %c0_i32 = arith.constant 0 : i32
    %c0_i32_0 = arith.constant 0 : i32
    %c0_i32_1 = arith.constant 0 : i32
    return %c0_i32, %c0_i32_0 : i32, i32
  }
  func.func @transform_1(%arg0: i32) -> (i32, i32, i32, i32) {
    %c0_i32 = arith.constant 0 : i32
    %c0_i32_0 = arith.constant 0 : i32
    %c0_i32_1 = arith.constant 0 : i32
    %c0_i32_2 = arith.constant 0 : i32
    return %arg0, %c0_i32, %c0_i32_0, %c0_i32_1 : i32, i32, i32, i32
  }
  func.func @transform_2(%arg0: i32) -> (i32, i32, i32, i32) {
    %c0_i32 = arith.constant 0 : i32
    %c0_i32_0 = arith.constant 0 : i32
    %c0_i32_1 = arith.constant 0 : i32
    %c0_i32_2 = arith.constant 0 : i32
    return %arg0, %c0_i32, %c0_i32_0, %c0_i32_1 : i32, i32, i32, i32
  }
  func.func @transform_3(%arg0: i32) -> (i32, i32, i32, i32) {
    %c0_i32 = arith.constant 0 : i32
    %c0_i32_0 = arith.constant 0 : i32
    %c0_i32_1 = arith.constant 0 : i32
    %c0_i32_2 = arith.constant 0 : i32
    return %arg0, %c0_i32, %c0_i32_0, %c0_i32_1 : i32, i32, i32, i32
  }
  func.func @transform_4(%arg0: i32) -> (i32, i32, i32, i32) {
    %c0_i32 = arith.constant 0 : i32
    %c0_i32_0 = arith.constant 0 : i32
    %c0_i32_1 = arith.constant 0 : i32
    %c0_i32_2 = arith.constant 0 : i32
    return %arg0, %c0_i32, %c0_i32_0, %c0_i32_1 : i32, i32, i32, i32
  }
  func.func @transform_5(%arg0: i32) -> (i32, i32, i32, i32) {
    %c0_i32 = arith.constant 0 : i32
    %c0_i32_0 = arith.constant 0 : i32
    %c0_i32_1 = arith.constant 0 : i32
    %c0_i32_2 = arith.constant 0 : i32
    return %arg0, %c0_i32, %c0_i32_0, %c0_i32_1 : i32, i32, i32, i32
  }
  func.func @transform_6(%arg0: i32) -> (i32, i32, i32, i32) {
    %c0_i32 = arith.constant 0 : i32
    %c0_i32_0 = arith.constant 0 : i32
    %c0_i32_1 = arith.constant 0 : i32
    %c0_i32_2 = arith.constant 0 : i32
    return %arg0, %c0_i32, %c0_i32_0, %c0_i32_1 : i32, i32, i32, i32
  }
  func.func @transform_7(%arg0: i32) -> (i32, i32) {
    %c0_i32 = arith.constant 0 : i32
    %c0_i32_0 = arith.constant 0 : i32
    %c0_i32_1 = arith.constant 0 : i32
    return %c0_i32, %c0_i32_0 : i32, i32
  }
  func.func @transform_8(%arg0: i32) -> (i32, i32) {
    %c0_i32 = arith.constant 0 : i32
    %c0_i32_0 = arith.constant 0 : i32
    %c0_i32_1 = arith.constant 0 : i32
    return %c0_i32, %c0_i32_0 : i32, i32
  }
  func.func @transform_9(%arg0: i32) -> (i32, i32, i32, i32) {
    %c0_i32 = arith.constant 0 : i32
    %c0_i32_0 = arith.constant 0 : i32
    %c0_i32_1 = arith.constant 0 : i32
    %c0_i32_2 = arith.constant 0 : i32
    return %arg0, %c0_i32, %c0_i32_0, %c0_i32_1 : i32, i32, i32, i32
  }
}

</mosaic_0001>

<bundles_post_ra>
// kernel: tpu_custom_call.1
= control target key start
LH: loop header
LB: loop body
LE: loop exit
PB: predicated region body
PF: predicated region fallthrough
CT: control target
= control target key end

     0   :  { %15 = vsyncpa [#allocation5], 0  ;;  %s3300_s0 = inlined_call_operand.vmem [shape: f32[4,512], index: 0, kind: input, shape index: {}]   ;;  %s3301_s1 = inlined_call_operand.vmem [shape: f32[2,3,4,1], index: 1, kind: input, shape index: {}]   ;;  %s3302_s2 = inlined_call_operand.vmem [shape: f32[2,3,4,1], index: 2, kind: input, shape index: {}]   ;;  %s3303_s3 = inlined_call_operand.vmem [shape: f32[2,3,4,2], index: 3, kind: input, shape index: {}]   ;;  %s3304_s4 = inlined_call_operand.vmem [shape: f32[2,3,4,1], index: 4, kind: input, shape index: {}]   ;;  %s3305_s5 = inlined_call_operand.vmem [shape: f32[2,2,4,1], index: 5, kind: input, shape index: {}]   ;;  %s3306_s6 = inlined_call_operand.vmem [shape: f32[2,2,4,1], index: 6, kind: input, shape index: {}]   ;;  %s3307_s7 = inlined_call_operand.hbm [shape: f32[4,512], index: 7, kind: output, shape index: {0}]   ;;  %s3308_s8 = inlined_call_operand.hbm [shape: f32[1,512], index: 8, kind: output, shape index: {1}]   ;;  %s3309_s9 = inlined_call_operand.vmem [shape: f32[2,2,4,1], index: 9, kind: output, shape index: {2}]  }
   0x1   :  { %16 = vsyncpa [#allocation7], 0  ;;  %s2816_s30 = smov 0  }
   0x2 LB: > { %s2822_s10 = sadd.s32 4294967295, %s2753_s30   ;;  %p2480_p0 = scmp.ge.s32.totalorder %s2753_s30, 1  ;;  %s2753_s30 = sphi %s2816_s30, %s22_s30  }
   0x3   : > { %p334_p1 = scmp.lt.s32.totalorder %s2753_s30, 3 }
   0x5   : > { %p335_p2 = pnand %p2480_p0, %p334_p1 }
   0x6   : > { %p395_p3 = scmp.lt.s32.totalorder (!%p335_p2), %s2822_s10, 1  ;;  %p2491_p4 = scmp.ne.s32.totalorder (!%p335_p2), %s2822_s10, 0 }
   0x7   : > { %338 = sbr.rel (%p335_p2) target bundleno = 1403 (0x57b), region = 48 }
   0xe   : > { %s396_s11 = scalar_select %p395_p3, %s2822_s10, 1 }
   0xf   : > { %433 = sbr.rel (%p2491_p4) target bundleno = 22 (0x16), region = 52  ;;  %v434_v0 = vld [vmem:[%s3300_s0] sm:$0xff] (!%p2491_p4)  ;;  %v435_v1 = vld [vmem:[%s3300_s0 + $0x8] sm:$0xff] (!%p2491_p4)  ;;  %v438_v2 = vlaneseq (!%p2491_p4)  ;;  %v2755_v3 = vmov (!%p2491_p4), 0.0  }
  0x10   : > { %s2535_s12 = smul.u32 12, %s396_s11  ;;  %s2532_s13 = sshll.u32 %s396_s11, 3  ;;  %436 = vst [vmem:[#allocation2] sm:$0xff] (!%p2491_p4), %v434_v0  ;;  %437 = vst [vmem:[#allocation2 + $0x8] sm:$0xff] (!%p2491_p4), %v435_v1 }
  0x11   : > { %s2831_s16 = scalar_lea.vmem %s3305_s5, %s2532_s13  ;;  %s2836_s19 = scalar_lea.vmem %s3306_s6, %s2532_s13  ;;  %vm440_vm0 = vcmp.lt.s32.totalorder (!%p2491_p4), %v438_v2, 512 }
  0x12   : > { %s2841_s22 = scalar_lea.vmem %s3301_s1, %s2535_s12  ;;  %s2846_s25 = scalar_lea.vmem %s3302_s2, %s2535_s12  ;;  %442 = vst.msk [vmem:[#allocation3] sm:$0xf] (!%p2491_p4), %vm440_vm0, %v2755_v3 }
  0x13   : > { %s2851_s28 = scalar_lea.vmem %s3303_s3, %s2535_s12  ;;  %s2856_s14 = scalar_lea.vmem %s3304_s4, %s2535_s12 }
  0x14   : > { %s2861_s18 = scalar_lea.vmem %s3309_s9, %s2532_s13 }
  0x16 PF: > { %p443_p5 = scmp.lt.s32.totalorder %s2822_s10, 0  ;;  %s444_s12 = ssub.s32 0, %s2822_s10 }
  0x17   : > { %s2492_s13 = smin.u32 %s2822_s10, %s444_s12 }
  0x18   : > { %s446_s26 = sand.u32 1, %s2492_s13  }
  0x19   : > { %s447_s27 = ssub.s32 0, %s446_s26 }
  0x1a   : > { %s3315_s27 = smov (!%p443_p5, %s447_s27), %s446_s26 }
  0x1b   : > { %p2494_p6 = scmp.lt.s32.totalorder %s3315_s27, 0  ;;  %s453_s29 = sadd.s32 2, %s3315_s27 }
  0x1d   : > { %s3317_s29 = smov (!%p2494_p6, %s453_s29), %s3315_s27 }
  0x1e   : > { %p2495_p7 = scmp.ne.s32.totalorder %s3317_s29, 0 }
  0x1f   : > { %v2496_v4 = vld [vmem:[%s2841_s22 + $0x4] sm:$0xf] (!%p2495_p7)  ;;  %v460_v5 = vld [vmem:[%s2841_s22] sm:$0xf] (!%p2495_p7)  ;;  %v2756_v6 = vmov (!%p2495_p7), 0   ;;  %v468_v13 = vlaneseq (!%p2495_p7)  ;;  %v459_v23 = vld [vmem:[#allocation2 + $0x8] sm:$0xff] (!%p2495_p7) }
  0x20   : > { %458 = sbr.rel (%p2495_p7) target bundleno = 688 (0x2b0), region = 56  ;;  %2568 = vset.pattern.permute.xlu1 (!%p2495_p7), %v2756_v6  ;;  %2567 = vset.pattern.permute.xlu0 (!%p2495_p7), %v2756_v6  ;;  %v2497_v7 = vld [vmem:[%s2846_s25 + $0x4] sm:$0xf] (!%p2495_p7)  ;;  %v474_v8 = vld [vmem:[%s2846_s25] sm:$0xf] (!%p2495_p7)  ;;  %vm561_vm1 = vcmask (!%p2495_p7), 1043456  }
  0x21   : > { %494 = vperm.xlu1 (!%p2495_p7), %2568, %v2496_v4   ;;  %463 = vperm.xlu0 (!%p2495_p7), %2567, %v460_v5   ;;  %v2499_v9 = vld [vmem:[%s2846_s25 + $0x8] sm:$0xf] (!%p2495_p7)  ;;  %v2757_v11 = vmov (!%p2495_p7), 839922192   ;;  %v2885_v15 = vshrl.u32 (!%p2495_p7), %v468_v13, 7  ;;  %v489_v17 = vld [vmem:[#allocation2] sm:$0xff] (!%p2495_p7) }
  0x22   : > { %v2498_v10 = vld [vmem:[%s2841_s22 + $0x8] sm:$0xf] (!%p2495_p7)  ;;  %v466_v12 = vunpack.c.l.s4 (!%p2495_p7), %v2757_v11  ;;  %v631_v57 = vld [vmem:[%s2836_s19] sm:$0xf] (!%p2495_p7)  ;;  %v2500_v61 = vld [vmem:[%s2851_s28 + $0x4] sm:$0xf] (!%p2495_p7) }
  0x23   : > { %v616_v58 = vld [vmem:[%s2831_s16] sm:$0xf] (!%p2495_p7)  ;;  %v2501_v62 = vld [vmem:[%s2856_s14 + $0x4] sm:$0xf] (!%p2495_p7)  ;;  %v2758_v63 = vmov (!%p2495_p7), 1   ;;  %vm648_vm2 = vcmask (!%p2495_p7), 3072  }
  0x24   : > { %v467_v14 = vunpack.c.0.s8 (!%p2495_p7), %v466_v12  ;;  %v651_v59 = vld [vmem:[%s2856_s14] sm:$0xf] (!%p2495_p7)  ;;  %v2504_v0 = vld [vmem:[%s2851_s28 + $0x8] sm:$0xf] (!%p2495_p7)  ;;  %vm797_vm3 = vcmask (!%p2495_p7), 1041408   ;;  %vm2983_vm4 = vcmp.lt.s32.totalorder (!%p2495_p7), %v468_v13, 512 }
  0x25   : > { %509 = vperm.xlu1 (!%p2495_p7), %2568, %v2497_v7   ;;  %477 = vperm.xlu0 (!%p2495_p7), %2567, %v474_v8   ;;  %v650_v60 = vld [vmem:[%s2851_s28] sm:$0xf] (!%p2495_p7)  ;;  %v2505_v1 = vld [vmem:[%s2856_s14 + $0x8] sm:$0xf] (!%p2495_p7) }
  0x26   : > { %v2888_v16 = vsub.s32 (!%p2495_p7), %v467_v14, %v2885_v15 }
  0x29   : > { %541 = vperm.xlu1 %2568, %v2499_v9   ;;  %526 = vperm.xlu0 %2567, %v2498_v10  }
  0xa0   : > { %v495_v18 = vpop.permute.xlu1 %494  ;;  %v464_v19 = vpop.permute.xlu0 %463 }
  0xa1   : > { %v502_v20 = vrot.slane %v495_v18, %v2888_v16  ;;  %v471_v22 = vrot.slane %v464_v19, %v2888_v16 }
  0xa3   : > { %v504_v21 = vmul.f32 %v502_v20, %v489_v17  ;;  %v473_v28 = vmul.f32 %v471_v22, %v459_v23 }
  0xa4   : > { %v510_v24 = vpop.permute.xlu1 %509  ;;  %v478_v25 = vpop.permute.xlu0 %477 }
  0xa5   : > { %v517_v26 = vrot.slane %v510_v24, %v2888_v16  ;;  %v485_v27 = vrot.slane %v478_v25, %v2888_v16 }
  0xa7   : > { %v2894_v29 = vadd.f32 %v517_v26, %v504_v21  ;;  %v487_v32 = vadd.f32 %v485_v27, %v473_v28  ;;  %v2929_v27 = vsub.s32 0, %v2885_v15  ;;  %v2932_v28 = vsub.s32 4, %v2885_v15 }
  0xa8   : > { %v542_v30 = vpop.permute.xlu1 %541  ;;  %v527_v31 = vpop.permute.xlu0 %526 }
  0xa9   : > { %v534_v33 = vrot.slane %v527_v31, %v2888_v16  ;;  %v557_v34 = vcombine.high %v2894_v29, %v2894_v29  ;;  %v572_v35 = vmul.f32 %v2894_v29, %v2894_v29  ;;  %v549_v36 = vrot.slane %v542_v30, %v2888_v16 }
  0xaa   : > { %v562_v41 = vsel %vm561_vm1, %v2894_v29, 0.0  ;;  %v2938_v30 = vsub.s32 5, %v2885_v15 }
  0xab   : > { %v536_v37 = vmul.f32 %v534_v33, %v487_v32  ;;  %v563_v38 = vsel %vm561_vm1, %v557_v34, 0.0  ;;  %v576_v39 = vcombine.high %v572_v35, %v572_v35  ;;  %v580_v47 = vsel %vm561_vm1, %v572_v35, 0.0 }
  0xac   : > { %v564_v42 = vadd.f32 %v563_v38, %v562_v41 }
  0xad   : > { %v551_v40 = vadd.f32 %v549_v36, %v536_v37  ;;  %v581_v43 = vsel %vm561_vm1, %v576_v39, 0.0 }
  0xae   : > { %v582_v49 = vadd.f32 %v581_v43, %v580_v47 }
  0xaf   : > { %v558_v44 = vcombine.high %v551_v40, %v551_v40  ;;  %v565_v45 = vsel %vm561_vm1, %v551_v40, 0.0  ;;  %v573_v46 = vmul.f32 %v551_v40, %v551_v40 }
  0xb0   : > { %v566_v48 = vadd.f32 %v565_v45, %v564_v42 }
  0xb1   : > { %v567_v50 = vsel %vm561_vm1, %v558_v44, 0.0  ;;  %v577_v51 = vcombine.high %v573_v46, %v573_v46  ;;  %v583_v52 = vsel %vm561_vm1, %v573_v46, 0.0 }
  0xb2   : > { %v568_v53 = vadd.f32 %v567_v50, %v566_v48  ;;  %v584_v54 = vadd.f32 %v583_v52, %v582_v49 }
  0xb3   : > { %v585_v55 = vsel %vm561_vm1, %v577_v51, 0.0 }
  0xb4   : > { %569 = vadd.xlane.f32.xlu0 %v568_v53  ;;  %v586_v56 = vadd.f32 %v585_v55, %v584_v54 }
  0xb6   : > { %587 = vadd.xlane.f32.xlu1 %v586_v56 }
  0xc7   : > { %634 = vperm.xlu1 %2568, %v631_v57  }
  0xca   : > { %619 = vperm.xlu0 %2567, %v616_v58  }
  0xcb   : > { %703 = vperm.xlu1 %2568, %v651_v59  }
  0xce   : > { %656 = vperm.xlu0 %2567, %v650_v60  }
  0xcf   : > { %869 = vperm.xlu1 %2568, %v2500_v61  }
  0xd2   : > { %2569 = vset.pattern.permute.xlu0 %v2758_v63 }
  0xd3   : > { %916 = vperm.xlu1 %2568, %v2501_v62   ;;  %711 = vperm.xlu0 %2569, %v650_v60  }
  0xd7   : > { %1079 = vperm.xlu1 %2568, %v2504_v0   ;;  %924 = vperm.xlu0 %2569, %v2500_v61  }
  0xdb   : > { %2571 = vset.pattern.permute.xlu1 %v2758_v63  ;;  %2570 = vset.pattern.permute.xlu0 %v2756_v6 }
  0xdc   : > { %1134 = vperm.xlu1 %2571, %v2504_v0   ;;  %1126 = vperm.xlu0 %2570, %v2505_v1  }
  0xe0   : > { %2572 = vset.pattern.permute.xlu1 %v2756_v6 }
 0x141   : > { %v570_v2 = vpop.xlane.xlu0 %569 }
 0x142   : > { %v571_v3 = vmul.f32 0.001953125, %v570_v2 }
 0x143   : > { %v588_v4 = vpop.xlane.xlu1 %587 }
 0x144   : > { %v590_v5 = vmul.f32 %v571_v3, %v571_v3  ;;  %v589_v7 = vmul.f32 0.001953125, %v588_v4  ;;  %v599_v10 = vrot.slane %v571_v3, %v2888_v16 }
 0x146   : > { %v591_v8 = vsub.f32 %v589_v7, %v590_v5  ;;  %v601_v14 = vsub.f32 %v2894_v29, %v599_v10  ;;  %v602_v17 = vsub.f32 %v551_v40, %v599_v10  ;;  %v2935_v29 = vsub.s32 1, %v2885_v15 }
 0x147   : > { %v635_v18 = vpop.permute.xlu1 %634 }
 0x148   : > { %v603_v9 = vadd.f32 1e-05, %v591_v8  ;;  %649 = vst.msk [vmem:[%s2861_s18] sm:$0xf] %vm648_vm2, %v591_v8  ;;  %v642_v22 = vrot.slane %v635_v18, %v2888_v16 }
 0x149   : > { %v620_v12 = vpop.permute.xlu0 %619 }
 0x14a   : > { %2575 = vrsqrt.f32 %v603_v9  ;;  %v627_v21 = vrot.slane %v620_v12, %v2888_v16 }
 0x14b   : > { %v704_v55 = vpop.permute.xlu1 %703 }
 0x14d   : > { %v657_v37 = vpop.permute.xlu0 %656 }
 0x152   : > { %v712_v54 = vpop.permute.xlu0 %711 }
 0x154   : > { %v2576_v11 = vpop.eup %2575 }
 0x155   : > { %v612_v6 = vrot.slane %v2576_v11, %v2888_v16 }
 0x157   : > { %v614_v19 = vmul.f32 %v612_v6, %v601_v14  ;;  %v615_v20 = vmul.f32 %v612_v6, %v602_v17 }
 0x159   : > { %v629_v23 = vmul.f32 %v627_v21, %v614_v19  ;;  %v630_v24 = vmul.f32 %v627_v21, %v615_v20 }
 0x15b   : > { %v644_v25 = vadd.f32 %v642_v22, %v629_v23  ;;  %v645_v26 = vadd.f32 %v642_v22, %v630_v24  ;;  %v2759_v22 = vmov 1966171168  }
 0x15c   : > { %v833_v23 = vunpack.c.l.s4 %v2759_v22 }
 0x15d   : > { %646 = vst [vmem:[#allocation2] sm:$0xff] %v644_v25  ;;  %647 = vst [vmem:[#allocation2 + $0x8] sm:$0xff] %v645_v26 }
 0x164   : > { %v652_v31 = vld [vmem:[#allocation2] sm:$0x33]  ;;  %v653_v32 = vld [vmem:[#allocation2 + $0x8] sm:$0x33] }
 0x165   : > { %v664_v33 = vrot.slane %v652_v31, %v2929_v27  ;;  %v668_v34 = vrot.slane %v652_v31, %v2932_v28  ;;  %v672_v35 = vrot.slane %v653_v32, %v2929_v27  ;;  %v676_v36 = vrot.slane %v653_v32, %v2932_v28 }
 0x166   : > { %v717_v38 = vrot.slane %v652_v31, %v2935_v29  ;;  %v721_v39 = vrot.slane %v652_v31, %v2938_v30  ;;  %v725_v40 = vrot.slane %v653_v32, %v2935_v29  ;;  %v729_v41 = vrot.slane %v653_v32, %v2938_v30 }
 0x167   : > { %v684_v42 = vrot.slane %v664_v33, %v2929_v27  ;;  %v688_v43 = vrot.slane %v668_v34, %v2929_v27  ;;  %v692_v44 = vrot.slane %v672_v35, %v2929_v27  ;;  %v696_v45 = vrot.slane %v676_v36, %v2929_v27 }
 0x168   : > { %v737_v46 = vrot.slane %v717_v38, %v2935_v29  ;;  %v741_v47 = vrot.slane %v721_v39, %v2935_v29  ;;  %v745_v48 = vrot.slane %v725_v40, %v2935_v29  ;;  %v749_v49 = vrot.slane %v729_v41, %v2935_v29 }
 0x169   : > { %v697_v50 = vmul.f32 %v684_v42, %v657_v37  ;;  %v698_v51 = vmul.f32 %v688_v43, %v657_v37  ;;  %v699_v52 = vmul.f32 %v692_v44, %v657_v37  ;;  %v700_v53 = vmul.f32 %v696_v45, %v657_v37 }
 0x16a   : > { %v750_v56 = vmul.f32 %v737_v46, %v712_v54  ;;  %v751_v57 = vmul.f32 %v741_v47, %v712_v54  ;;  %v752_v58 = vmul.f32 %v745_v48, %v712_v54  ;;  %v753_v63 = vmul.f32 %v749_v49, %v712_v54 }
 0x16b   : > { %v706_v59 = vadd.f32 %v704_v55, %v697_v50  ;;  %v707_v60 = vadd.f32 %v704_v55, %v698_v51  ;;  %v708_v61 = vadd.f32 %v704_v55, %v699_v52  ;;  %v709_v62 = vadd.f32 %v704_v55, %v700_v53 }
 0x16c   : > { %v834_v38 = vunpack.c.0.s8 %v833_v23 }
 0x16d   : > { %v2956_v0 = vadd.f32 %v750_v56, %v706_v59  ;;  %v2958_v1 = vadd.f32 %v751_v57, %v707_v60  ;;  %v2960_v2 = vadd.f32 %v752_v58, %v708_v61  ;;  %v2962_v3 = vadd.f32 %v753_v63, %v709_v62  ;;  %v762_v59 = vld [vmem:[#allocation2] sm:$0xcc] }
 0x16e   : > { %v2973_v49 = vsub.s32 %v834_v38, %v2885_v15 }
 0x16f   : > { %2577 = vtanh.f32 %v2956_v0 }
 0x170   : > { %2579 = vtanh.f32 %v2958_v1 }
 0x171   : > { %2581 = vtanh.f32 %v2960_v2 }
 0x172   : > { %2583 = vtanh.f32 %v2962_v3 }
 0x179   : > { %v2578_v4 = vpop.eup %2577 }
 0x17a   : > { %v2580_v5 = vpop.eup %2579  ;;  %v764_v7 = vmul.f32 1.442695, %v2578_v4  ;;  %v798_v8 = vsel %vm797_vm3, %v2578_v4, 0.0  ;;  %v788_v4 = vcombine.low %v2956_v0, %v2958_v1  ;;  %v876_v1 = vsub.s32 2, %v2885_v15 }
 0x17b   : > { %v2582_v9 = vpop.eup %2581  ;;  %v766_v10 = vmul.f32 1.442695, %v2580_v5  ;;  %v799_v11 = vrot.slane %v798_v8, 4  ;;  %v805_v12 = vsel %vm797_vm3, %v2580_v5, 0.0  ;;  %v763_v5 = vld [vmem:[#allocation2 + $0x8] sm:$0xcc] }
 0x17c   : > { %v2584_v14 = vpop.eup %2583  ;;  %2585 = vpow2.f32 %v764_v7  ;;  %v768_v17 = vmul.f32 1.442695, %v2582_v9  ;;  %v806_v6 = vrot.slane %v805_v12, 4  ;;  %v812_v18 = vsel %vm797_vm3, %v2582_v9, 0.0 }
 0x17d   : > { %2587 = vpow2.f32 %v766_v10  ;;  %v770_v19 = vmul.f32 1.442695, %v2584_v14  ;;  %v800_v20 = vadd.f32 %v799_v11, %v798_v8  ;;  %v813_v21 = vrot.slane %v812_v18, 4 }
 0x17e   : > { %2589 = vpow2.f32 %v768_v17  ;;  %v807_v24 = vadd.f32 %v806_v6, %v805_v12  ;;  %v819_v25 = vsel %vm797_vm3, %v2584_v14, 0.0  ;;  %v789_v9 = vcombine.low %v2960_v2, %v2962_v3  ;;  %v796_v12 = vld [vmem:[#allocation3] sm:$0xf] }
 0x17f   : > { %2591 = vpow2.f32 %v770_v19  ;;  %v801_v26 = vrot.slane %v800_v20, 2  ;;  %v814_v31 = vadd.f32 %v813_v21, %v812_v18  ;;  %v820_v32 = vrot.slane %v819_v25, 4  ;;  %v870_v19 = vpop.permute.xlu1 %869 }
 0x180   : > { %v808_v33 = vrot.slane %v807_v24, 2  ;;  %v880_v18 = vsub.s32 6, %v2885_v15  ;;  %v929_v2 = vsub.s32 3, %v2885_v15  ;;  %v933_v3 = vsub.s32 7, %v2885_v15 }
 0x181   : > { %v802_v34 = vadd.f32 %v801_v26, %v800_v20  ;;  %v815_v35 = vrot.slane %v814_v31, 2  ;;  %v821_v36 = vadd.f32 %v820_v32, %v819_v25 }
 0x182   : > { %v809_v37 = vadd.f32 %v808_v33, %v807_v24 }
 0x183   : > { %v803_v39 = vrot.slane %v802_v34, 1  ;;  %v816_v40 = vadd.f32 %v815_v35, %v814_v31  ;;  %v822_v41 = vrot.slane %v821_v36, 2 }
 0x184   : > { %v810_v42 = vrot.slane %v809_v37, 1 }
 0x185   : > { %v804_v43 = vadd.f32 %v803_v39, %v802_v34  ;;  %v817_v44 = vrot.slane %v816_v40, 1  ;;  %v823_v45 = vadd.f32 %v822_v41, %v821_v36  ;;  %v917_v41 = vpop.permute.xlu1 %916 }
 0x186   : > { %v2586_v46 = vpop.eup %2585  ;;  %v811_v47 = vadd.f32 %v810_v42, %v809_v37 }
 0x187   : > { %v2588_v48 = vpop.eup %2587  ;;  %v818_v50 = vadd.f32 %v817_v44, %v816_v40  ;;  %v824_v51 = vrot.slane %v823_v45, 1  ;;  %v925_v40 = vpop.permute.xlu0 %924 }
 0x188   : > { %v2590_v52 = vpop.eup %2589  ;;  %v776_v53 = vcombine.low %v2586_v46, %v2588_v48  ;;  %v830_v54 = vcombine.low %v804_v43, %v811_v47 }
 0x189   : > { %v2592_v55 = vpop.eup %2591  ;;  %v825_v56 = vadd.f32 %v824_v51, %v823_v45 }
 0x18a   : > { %v777_v57 = vcombine.low %v2590_v52, %v2592_v55  ;;  %v778_v58 = vrot.slane %v776_v53, 6  ;;  %v838_v61 = vrot.slane %v830_v54, %v2973_v49 }
 0x18b   : > { %v831_v60 = vcombine.low %v818_v50, %v825_v56 }
 0x18c   : > { %v779_v62 = vrot.slane %v777_v57, 6  ;;  %v782_v63 = vmul.f32 %v778_v58, %v762_v59 }
 0x18d   : > { %v845_v7 = vrot.slane %v831_v60, %v2973_v49 }
 0x18e   : > { %v783_v8 = vmul.f32 %v779_v62, %v763_v5  ;;  %v792_v10 = vadd.f32 %v788_v4, %v782_v63 }
 0x18f   : > { %v846_v11 = vcombine.low %v838_v61, %v845_v7 }
 0x190   : > { %v793_v14 = vadd.f32 %v789_v9, %v783_v8  ;;  %794 = vst [vmem:[#allocation2] sm:$0xcc] %v792_v10 }
 0x191   : > { %v853_v17 = vrot.slane %v846_v11, %v2973_v49 }
 0x192   : > { %795 = vst [vmem:[#allocation2 + $0x8] sm:$0xcc] %v793_v14 }
 0x193   : > { %v855_v0 = vadd.f32 %v853_v17, %v796_v12 }
 0x195   : > { %860 = vst.msk [vmem:[#allocation3] sm:$0xf] %vm2983_vm4, %v855_v0 }
 0x197   : > { %v865_v20 = vld [vmem:[#allocation2] sm:$0xcc] }
 0x198   : > { %v877_v21 = vrot.slane %v865_v20, %v876_v1  ;;  %v881_v13 = vrot.slane %v865_v20, %v880_v18  ;;  %v930_v22 = vrot.slane %v865_v20, %v929_v2  ;;  %v934_v23 = vrot.slane %v865_v20, %v933_v3 }
 0x199   : > { %v866_v24 = vld [vmem:[#allocation2 + $0x8] sm:$0xcc] }
 0x19a   : > { %v885_v25 = vrot.slane %v866_v24, %v876_v1  ;;  %v889_v26 = vrot.slane %v866_v24, %v880_v18  ;;  %v897_v31 = vrot.slane %v877_v21, %v876_v1  ;;  %v901_v32 = vrot.slane %v881_v13, %v876_v1 }
 0x19b   : > { %v938_v33 = vrot.slane %v866_v24, %v929_v2  ;;  %v942_v34 = vrot.slane %v866_v24, %v933_v3  ;;  %v950_v35 = vrot.slane %v930_v22, %v929_v2  ;;  %v954_v36 = vrot.slane %v934_v23, %v929_v2 }
 0x19c   : > { %v905_v37 = vrot.slane %v885_v25, %v876_v1  ;;  %v909_v15 = vrot.slane %v889_v26, %v876_v1  ;;  %v910_v38 = vmul.f32 %v897_v31, %v870_v19  ;;  %v911_v39 = vmul.f32 %v901_v32, %v870_v19 }
 0x19d   : > { %v958_v42 = vrot.slane %v938_v33, %v929_v2  ;;  %v962_v43 = vrot.slane %v942_v34, %v929_v2  ;;  %v963_v44 = vmul.f32 %v950_v35, %v925_v40  ;;  %v964_v45 = vmul.f32 %v954_v36, %v925_v40 }
 0x19e   : > { %v912_v46 = vmul.f32 %v905_v37, %v870_v19  ;;  %v913_v47 = vmul.f32 %v909_v15, %v870_v19  ;;  %v919_v48 = vadd.f32 %v917_v41, %v910_v38  ;;  %v920_v50 = vadd.f32 %v917_v41, %v911_v39 }
 0x19f   : > { %v965_v51 = vmul.f32 %v958_v42, %v925_v40  ;;  %v966_v52 = vmul.f32 %v962_v43, %v925_v40 }
 0x1a0   : > { %v921_v53 = vadd.f32 %v917_v41, %v912_v46  ;;  %v922_v54 = vadd.f32 %v917_v41, %v913_v47  ;;  %v967_v55 = vadd.f32 %v963_v44, %v919_v48  ;;  %v968_v56 = vadd.f32 %v964_v45, %v920_v50  ;;  %v975_v44 = vld [vmem:[#allocation2] sm:$0x33]  ;;  %v976_v50 = vld [vmem:[#allocation2 + $0x8] sm:$0x33] }
 0x1a2   : > { %v969_v57 = vadd.f32 %v965_v51, %v921_v53  ;;  %v970_v58 = vadd.f32 %v966_v52, %v922_v54  ;;  %2593 = vtanh.f32 %v967_v55  ;;  %v999_v35 = vcombine.low %v967_v55, %v968_v56 }
 0x1a3   : > { %2595 = vtanh.f32 %v968_v56 }
 0x1a4   : > { %2597 = vtanh.f32 %v969_v57  ;;  %v1000_v41 = vcombine.low %v969_v57, %v970_v58  ;;  %v2502_v48 = vrot.slane %v999_v35, 10 }
 0x1a5   : > { %2599 = vtanh.f32 %v970_v58  ;;  %v1011_v58 = vld [vmem:[#allocation3] sm:$0xf] }
 0x1a6   : > { %v2503_v54 = vrot.slane %v1000_v41, 10 }
 0x1ac   : > { %v2594_v59 = vpop.eup %2593 }
 0x1ad   : > { %v2596_v60 = vpop.eup %2595  ;;  %v977_v61 = vmul.f32 1.442695, %v2594_v59  ;;  %v1012_v62 = vsel %vm797_vm3, %v2594_v59, 0.0 }
 0x1ae   : > { %v2598_v63 = vpop.eup %2597  ;;  %v979_v4 = vmul.f32 1.442695, %v2596_v60  ;;  %v1013_v5 = vrot.slane %v1012_v62, 4  ;;  %v1019_v7 = vsel %vm797_vm3, %v2596_v60, 0.0 }
 0x1af   : > { %v2600_v8 = vpop.eup %2599  ;;  %2601 = vpow2.f32 %v977_v61  ;;  %v981_v9 = vmul.f32 1.442695, %v2598_v63  ;;  %v1020_v10 = vrot.slane %v1019_v7, 4  ;;  %v1026_v11 = vsel %vm797_vm3, %v2598_v63, 0.0 }
 0x1b0   : > { %2603 = vpow2.f32 %v979_v4  ;;  %v983_v12 = vmul.f32 1.442695, %v2600_v8  ;;  %v1014_v14 = vadd.f32 %v1013_v5, %v1012_v62  ;;  %v1027_v17 = vrot.slane %v1026_v11, 4  ;;  %v1080_v62 = vpop.permute.xlu1 %1079 }
 0x1b1   : > { %2605 = vpow2.f32 %v981_v9  ;;  %v1021_v0 = vadd.f32 %v1020_v10, %v1019_v7  ;;  %v1033_v1 = vsel %vm797_vm3, %v2600_v8, 0.0 }
 0x1b2   : > { %2607 = vpow2.f32 %v983_v12  ;;  %v1015_v18 = vrot.slane %v1014_v14, 2  ;;  %v1028_v2 = vadd.f32 %v1027_v17, %v1026_v11  ;;  %v1034_v3 = vrot.slane %v1033_v1, 4 }
 0x1b3   : > { %v1022_v19 = vrot.slane %v1021_v0, 2 }
 0x1b4   : > { %v1016_v20 = vadd.f32 %v1015_v18, %v1014_v14  ;;  %v1029_v21 = vrot.slane %v1028_v2, 2  ;;  %v1035_v13 = vadd.f32 %v1034_v3, %v1033_v1  ;;  %v1135_v17 = vpop.permute.xlu1 %1134 }
 0x1b5   : > { %v1023_v22 = vadd.f32 %v1022_v19, %v1021_v0 }
 0x1b6   : > { %v1017_v23 = vrot.slane %v1016_v20, 1  ;;  %v1030_v24 = vadd.f32 %v1029_v21, %v1028_v2  ;;  %v1036_v25 = vrot.slane %v1035_v13, 2 }
 0x1b7   : > { %v1024_v26 = vrot.slane %v1023_v22, 1 }
 0x1b8   : > { %v1018_v31 = vadd.f32 %v1017_v23, %v1016_v20  ;;  %v1031_v32 = vrot.slane %v1030_v24, 1  ;;  %v1037_v33 = vadd.f32 %v1036_v25, %v1035_v13  ;;  %v1127_v20 = vpop.permute.xlu0 %1126 }
 0x1b9   : > { %v2602_v34 = vpop.eup %2601  ;;  %v1025_v36 = vadd.f32 %v1024_v26, %v1023_v22 }
 0x1ba   : > { %v2604_v37 = vpop.eup %2603  ;;  %v1032_v15 = vadd.f32 %v1031_v32, %v1030_v24  ;;  %v1038_v38 = vrot.slane %v1037_v33, 1 }
 0x1bb   : > { %v2606_v39 = vpop.eup %2605  ;;  %v989_v40 = vcombine.low %v2602_v34, %v2604_v37  ;;  %v1044_v42 = vcombine.low %v1018_v31, %v1025_v36 }
 0x1bc   : > { %v2608_v43 = vpop.eup %2607  ;;  %v1039_v45 = vadd.f32 %v1038_v38, %v1037_v33 }
 0x1bd   : > { %v990_v46 = vcombine.low %v2606_v39, %v2608_v43  ;;  %v993_v47 = vmul.f32 %v989_v40, %v975_v44  ;;  %v1052_v52 = vrot.slane %v1044_v42, %v2973_v49 }
 0x1be   : > { %v1045_v51 = vcombine.low %v1032_v15, %v1039_v45 }
 0x1bf   : > { %v994_v53 = vmul.f32 %v990_v46, %v976_v50  ;;  %v1007_v55 = vadd.f32 %v2502_v48, %v993_v47 }
 0x1c0   : > { %v1059_v56 = vrot.slane %v1045_v51, %v2973_v49 }
 0x1c1   : > { %v1008_v59 = vadd.f32 %v2503_v54, %v994_v53  ;;  %1009 = vst [vmem:[#allocation2] sm:$0x33] %v1007_v55 }
 0x1c2   : > { %v1060_v60 = vcombine.low %v1052_v52, %v1059_v56 }
 0x1c3   : > { %1010 = vst [vmem:[#allocation2 + $0x8] sm:$0x33] %v1008_v59 }
 0x1c4   : > { %v1067_v57 = vrot.slane %v1060_v60, %v2973_v49 }
 0x1c6   : > { %v1069_v61 = vadd.f32 %v1067_v57, %v1011_v58 }
 0x1c8   : > { %1070 = vst.msk [vmem:[#allocation3] sm:$0xf] %vm2983_vm4, %v1069_v61  ;;  %v1075_v63 = vld [vmem:[#allocation2] sm:$0x33] }
 0x1c9   : > { %v1140_v4 = vrot.slane %v1075_v63, %v2935_v29  ;;  %v1144_v5 = vrot.slane %v1075_v63, %v2938_v30  ;;  %v1087_v7 = vrot.slane %v1075_v63, %v2929_v27  ;;  %v1091_v8 = vrot.slane %v1075_v63, %v2932_v28 }
 0x1ca   : > { %v1076_v9 = vld [vmem:[#allocation2 + $0x8] sm:$0x33] }
 0x1cb   : > { %v1148_v10 = vrot.slane %v1076_v9, %v2935_v29  ;;  %v1152_v11 = vrot.slane %v1076_v9, %v2938_v30  ;;  %v1160_v12 = vrot.slane %v1140_v4, %v2935_v29  ;;  %v1164_v14 = vrot.slane %v1144_v5, %v2935_v29 }
 0x1cc   : > { %v1095_v0 = vrot.slane %v1076_v9, %v2929_v27  ;;  %v1099_v1 = vrot.slane %v1076_v9, %v2932_v28  ;;  %v1107_v18 = vrot.slane %v1087_v7, %v2929_v27  ;;  %v1111_v2 = vrot.slane %v1091_v8, %v2929_v27 }
 0x1cd   : > { %v1168_v3 = vrot.slane %v1148_v10, %v2935_v29  ;;  %v1172_v19 = vrot.slane %v1152_v11, %v2935_v29  ;;  %v1173_v23 = vmul.f32 %v1160_v12, %v1135_v17  ;;  %v1174_v24 = vmul.f32 %v1164_v14, %v1135_v17 }
 0x1ce   : > { %v1115_v30 = vrot.slane %v1095_v0, %v2929_v27  ;;  %v1119_v21 = vrot.slane %v1099_v1, %v2929_v27  ;;  %v1120_v13 = vmul.f32 %v1107_v18, %v1080_v62  ;;  %v1121_v22 = vmul.f32 %v1111_v2, %v1080_v62 }
 0x1cf   : > { %v1175_v32 = vmul.f32 %v1168_v3, %v1135_v17  ;;  %v1176_v33 = vmul.f32 %v1172_v19, %v1135_v17 }
 0x1d0   : > { %v1122_v25 = vmul.f32 %v1115_v30, %v1080_v62  ;;  %v1123_v26 = vmul.f32 %v1119_v21, %v1080_v62  ;;  %v1129_v28 = vadd.f32 %v1127_v20, %v1120_v13  ;;  %v1130_v31 = vadd.f32 %v1127_v20, %v1121_v22  ;;  %v1185_v21 = vld [vmem:[#allocation2] sm:$0xcc] }
 0x1d2   : > { %v1131_v34 = vadd.f32 %v1127_v20, %v1122_v25  ;;  %v1132_v35 = vadd.f32 %v1127_v20, %v1123_v26  ;;  %v3018_v36 = vadd.f32 %v1173_v23, %v1129_v28  ;;  %v3020_v29 = vadd.f32 %v1174_v24, %v1130_v31  ;;  %v1186_v26 = vld [vmem:[#allocation2 + $0x8] sm:$0xcc] }
 0x1d4   : > { %v3022_v37 = vadd.f32 %v1175_v32, %v1131_v34  ;;  %v3024_v15 = vadd.f32 %v1176_v33, %v1132_v35  ;;  %2609 = vtanh.f32 %v3018_v36  ;;  %v1211_v25 = vcombine.low %v3018_v36, %v3020_v29 }
 0x1d5   : > { %2611 = vtanh.f32 %v3020_v29 }
 0x1d6   : > { %2613 = vtanh.f32 %v3022_v37  ;;  %v1212_v32 = vcombine.low %v3022_v37, %v3024_v15 }
 0x1d7   : > { %2615 = vtanh.f32 %v3024_v15 }
 0x1de   : > { %v2610_v27 = vpop.eup %2609 }
 0x1df   : > { %v2612_v38 = vpop.eup %2611  ;;  %v1187_v39 = vmul.f32 1.442695, %v2610_v27  ;;  %v1220_v40 = vsel %vm797_vm3, %v2610_v27, 0.0 }
 0x1e0   : > { %v2614_v41 = vpop.eup %2613  ;;  %v1189_v42 = vmul.f32 1.442695, %v2612_v38  ;;  %v1221_v43 = vrot.slane %v1220_v40, 4  ;;  %v1227_v44 = vsel %vm797_vm3, %v2612_v38, 0.0  ;;  %v1219_v38 = vld [vmem:[#allocation3] sm:$0xf] }
 0x1e1   : > { %v2616_v45 = vpop.eup %2615  ;;  %2617 = vpow2.f32 %v1187_v39  ;;  %v1191_v46 = vmul.f32 1.442695, %v2614_v41  ;;  %v1228_v47 = vrot.slane %v1227_v44, 4  ;;  %v1234_v48 = vsel %vm797_vm3, %v2614_v41, 0.0 }
 0x1e2   : > { %2619 = vpow2.f32 %v1189_v42  ;;  %v1193_v50 = vmul.f32 1.442695, %v2616_v45  ;;  %v1222_v51 = vadd.f32 %v1221_v43, %v1220_v40  ;;  %v1235_v52 = vrot.slane %v1234_v48, 4 }
 0x1e3   : > { %2621 = vpow2.f32 %v1191_v46  ;;  %v1229_v53 = vadd.f32 %v1228_v47, %v1227_v44  ;;  %v1241_v54 = vsel %vm797_vm3, %v2616_v45, 0.0 }
 0x1e4   : > { %2623 = vpow2.f32 %v1193_v50  ;;  %v1223_v55 = vrot.slane %v1222_v51, 2  ;;  %v1236_v56 = vadd.f32 %v1235_v52, %v1234_v48  ;;  %v1242_v59 = vrot.slane %v1241_v54, 4 }
 0x1e5   : > { %v1230_v60 = vrot.slane %v1229_v53, 2 }
 0x1e6   : > { %v1224_v57 = vadd.f32 %v1223_v55, %v1222_v51  ;;  %v1237_v58 = vrot.slane %v1236_v56, 2  ;;  %v1243_v61 = vadd.f32 %v1242_v59, %v1241_v54  ;;  %v2507_v59 = vld [vmem:[%s2836_s19 + $0x4] sm:$0xf] }
 0x1e7   : > { %v1231_v62 = vadd.f32 %v1230_v60, %v1229_v53  ;;  %v2506_v60 = vld [vmem:[%s2831_s16 + $0x4] sm:$0xf] }
 0x1e8   : > { %v1225_v63 = vrot.slane %v1224_v57, 1  ;;  %v1238_v4 = vadd.f32 %v1237_v58, %v1236_v56  ;;  %v1244_v5 = vrot.slane %v1243_v61, 2 }
 0x1e9   : > { %v1232_v7 = vrot.slane %v1231_v62, 1 }
 0x1ea   : > { %v1226_v8 = vadd.f32 %v1225_v63, %v1224_v57  ;;  %v1239_v9 = vrot.slane %v1238_v4, 1  ;;  %v1245_v10 = vadd.f32 %v1244_v5, %v1243_v61 }
 0x1eb   : > { %v2618_v11 = vpop.eup %2617  ;;  %v1233_v12 = vadd.f32 %v1232_v7, %v1231_v62 }
 0x1ec   : > { %v2620_v14 = vpop.eup %2619  ;;  %v1240_v17 = vadd.f32 %v1239_v9, %v1238_v4  ;;  %v1246_v0 = vrot.slane %v1245_v10, 1 }
 0x1ed   : > { %v2622_v1 = vpop.eup %2621  ;;  %v1199_v18 = vcombine.low %v2618_v11, %v2620_v14  ;;  %v1252_v2 = vcombine.low %v1226_v8, %v1233_v12 }
 0x1ee   : > { %v2624_v3 = vpop.eup %2623  ;;  %v1247_v19 = vadd.f32 %v1246_v0, %v1245_v10 }
 0x1ef   : > { %v1200_v20 = vcombine.low %v2622_v1, %v2624_v3  ;;  %v1201_v30 = vrot.slane %v1199_v18, 6  ;;  %v1260_v22 = vrot.slane %v1252_v2, %v2973_v49 }
 0x1f0   : > { %v1253_v13 = vcombine.low %v1240_v17, %v1247_v19 }
 0x1f1   : > { %v1202_v23 = vrot.slane %v1200_v20, 6  ;;  %v1205_v24 = vmul.f32 %v1201_v30, %v1185_v21 }
 0x1f2   : > { %v1267_v28 = vrot.slane %v1253_v13, %v2973_v49 }
 0x1f3   : > { %v1206_v31 = vmul.f32 %v1202_v23, %v1186_v26  ;;  %v1215_v33 = vadd.f32 %v1211_v25, %v1205_v24 }
 0x1f4   : > { %v1268_v34 = vcombine.low %v1260_v22, %v1267_v28 }
 0x1f5   : > { %v1216_v35 = vadd.f32 %v1212_v32, %v1206_v31  ;;  %1217 = vst [vmem:[#allocation2] sm:$0xcc] %v1215_v33 }
 0x1f6   : > { %v1275_v27 = vrot.slane %v1268_v34, %v2973_v49 }
 0x1f7   : > { %1218 = vst [vmem:[#allocation2 + $0x8] sm:$0xcc] %v1216_v35 }
 0x1f8   : > { %v1277_v39 = vadd.f32 %v1275_v27, %v1219_v38 }
 0x1fa   : > { %1278 = vst.msk [vmem:[#allocation3] sm:$0xf] %vm2983_vm4, %v1277_v39 }
 0x1fc   : > { %v1279_v36 = vld [vmem:[#allocation2] sm:$0xff] }
 0x1fd   : > { %v1283_v29 = vcombine.high %v1279_v36, %v1279_v36  ;;  %v1297_v40 = vmul.f32 %v1279_v36, %v1279_v36  ;;  %v1287_v43 = vsel %vm561_vm1, %v1279_v36, 0.0 }
 0x1fe   : > { %v1280_v41 = vld [vmem:[#allocation2 + $0x8] sm:$0xff] }
 0x1ff   : > { %v1284_v42 = vcombine.high %v1280_v41, %v1280_v41  ;;  %v1288_v37 = vsel %vm561_vm1, %v1283_v29, 0.0  ;;  %v1298_v15 = vmul.f32 %v1280_v41, %v1280_v41  ;;  %v1301_v45 = vcombine.high %v1297_v40, %v1297_v40 }
 0x200   : > { %v1289_v44 = vadd.f32 %v1288_v37, %v1287_v43  ;;  %v1290_v49 = vsel %vm561_vm1, %v1280_v41, 0.0  ;;  %v1305_v6 = vsel %vm561_vm1, %v1297_v40, 0.0 }
 0x201   : > { %v1302_v47 = vcombine.high %v1298_v15, %v1298_v15  ;;  %v1306_v48 = vsel %vm561_vm1, %v1301_v45, 0.0  ;;  %v1292_v50 = vsel %vm561_vm1, %v1284_v42, 0.0  ;;  %v1308_v53 = vsel %vm561_vm1, %v1298_v15, 0.0 }
 0x202   : > { %v1291_v46 = vadd.f32 %v1290_v49, %v1289_v44  ;;  %v1307_v51 = vadd.f32 %v1306_v48, %v1305_v6 }
 0x203   : > { %v1310_v55 = vsel %vm561_vm1, %v1302_v47, 0.0 }
 0x204   : > { %v1293_v52 = vadd.f32 %v1292_v50, %v1291_v46  ;;  %v1309_v54 = vadd.f32 %v1308_v53, %v1307_v51 }
 0x206   : > { %1294 = vadd.xlane.f32.xlu1 %v1293_v52  ;;  %v1311_v56 = vadd.f32 %v1310_v55, %v1309_v54 }
 0x208   : > { %1312 = vadd.xlane.f32.xlu0 %v1311_v56 }
 0x217   : > { %1361 = vperm.xlu1 %2572, %v2507_v59  }
 0x21e   : > { %1345 = vperm.xlu0 %2570, %v2506_v60  }
 0x293   : > { %v1295_v57 = vpop.xlane.xlu1 %1294 }
 0x294   : > { %v1296_v58 = vmul.f32 0.001953125, %v1295_v57 }
 0x295   : > { %v1313_v62 = vpop.xlane.xlu0 %1312 }
 0x296   : > { %v1315_v61 = vmul.f32 %v1296_v58, %v1296_v58  ;;  %v1314_v63 = vmul.f32 0.001953125, %v1313_v62  ;;  %v1324_v7 = vrot.slane %v1296_v58, %v2888_v16 }
 0x297   : > { %v1362_v10 = vpop.permute.xlu1 %1361 }
 0x298   : > { %v1316_v4 = vsub.f32 %v1314_v63, %v1315_v61  ;;  %v1326_v11 = vsub.f32 %v1279_v36, %v1324_v7  ;;  %v1327_v12 = vsub.f32 %v1280_v41, %v1324_v7  ;;  %v1369_v18 = vrot.slane %v1362_v10, %v2888_v16 }
 0x29a   : > { %v1328_v5 = vadd.f32 1e-05, %v1316_v4  ;;  %2508 = vst.msk [vmem:[%s2861_s18 + $0x4] sm:$0xf] %vm648_vm2, %v1316_v4 }
 0x29c   : > { %2625 = vrsqrt.f32 %v1328_v5 }
 0x29d   : > { %v1346_v9 = vpop.permute.xlu0 %1345 }
 0x29e   : > { %v1353_v1 = vrot.slane %v1346_v9, %v2888_v16 }
 0x2a6   : > { %v2626_v8 = vpop.eup %2625 }
 0x2a7   : > { %v1337_v14 = vrot.slane %v2626_v8, %v2888_v16 }
 0x2a9   : > { %v1339_v17 = vmul.f32 %v1337_v14, %v1326_v11  ;;  %v1340_v0 = vmul.f32 %v1337_v14, %v1327_v12 }
 0x2ab   : > { %v1355_v2 = vmul.f32 %v1353_v1, %v1339_v17  ;;  %v1356_v3 = vmul.f32 %v1353_v1, %v1340_v0 }
 0x2ad   : > { %v1371_v19 = vadd.f32 %v1369_v18, %v1355_v2  ;;  %v1372_v20 = vadd.f32 %v1369_v18, %v1356_v3 }
 0x2af   : > { %1373 = vst [vmem:[#allocation2] sm:$0xff] %v1371_v19  ;;  %1374 = vst [vmem:[#allocation2 + $0x8] sm:$0xff] %v1372_v20 }
 0x2b0 PF: > { %p2509_p8 = scmp.ne.s32.totalorder %s3317_s29, 1 }
 0x2b1   : > { %v1382_v30 = vld [vmem:[%s2841_s22] sm:$0xf] (!%p2509_p8)  ;;  %v2512_v21 = vld [vmem:[%s2841_s22 + $0x8] sm:$0xf] (!%p2509_p8)  ;;  %v2760_v13 = vmov (!%p2509_p8), 0   ;;  %v1390_v28 = vlaneseq (!%p2509_p8)  ;;  %vm1483_vm5 = vcmask (!%p2509_p8), 1043456  }
 0x2b2   : > { %1380 = sbr.rel (%p2509_p8) target bundleno = 1346 (0x542), region = 60  ;;  %2627 = vset.pattern.permute.xlu0 (!%p2509_p8), %v2760_v13  ;;  %2628 = vset.pattern.permute.xlu1 (!%p2509_p8), %v2760_v13  ;;  %v1396_v16 = vld [vmem:[%s2846_s25] sm:$0xf] (!%p2509_p8)  ;;  %v2513_v22 = vld [vmem:[%s2846_s25 + $0x8] sm:$0xf] (!%p2509_p8)  ;;  %v2762_v18 = vmov (!%p2509_p8), 1  }
 0x2b3   : > { %1385 = vperm.xlu0 (!%p2509_p8), %2627, %v1382_v30   ;;  %1448 = vperm.xlu1 (!%p2509_p8), %2628, %v2512_v21   ;;  %v2510_v23 = vld [vmem:[%s2841_s22 + $0x4] sm:$0xf] (!%p2509_p8)  ;;  %v2761_v25 = vmov (!%p2509_p8), 839922192   ;;  %v3069_v32 = vshrl.u32 (!%p2509_p8), %v1390_v28, 7  ;;  %vm1570_vm6 = vcmask (!%p2509_p8), 3072  }
 0x2b4   : > { %v2511_v24 = vld [vmem:[%s2846_s25 + $0x4] sm:$0xf] (!%p2509_p8)  ;;  %v1388_v26 = vunpack.c.l.s4 (!%p2509_p8), %v2761_v25  ;;  %v1553_v11 = vld [vmem:[%s2836_s19] sm:$0xf] (!%p2509_p8)  ;;  %v2518_v2 = vld [vmem:[%s2851_s28 + $0x8] sm:$0xf] (!%p2509_p8) }
 0x2b5   : > { %v1538_v12 = vld [vmem:[%s2831_s16] sm:$0xf] (!%p2509_p8)  ;;  %v2516_v0 = vld [vmem:[%s2851_s28 + $0x4] sm:$0xf] (!%p2509_p8)  ;;  %v2519_v3 = vld [vmem:[%s2856_s14 + $0x8] sm:$0xf] (!%p2509_p8) }
 0x2b6   : > { %v1389_v31 = vunpack.c.0.s8 (!%p2509_p8), %v1388_v26  ;;  %v1381_v38 = vld [vmem:[#allocation2] sm:$0xff] (!%p2509_p8)  ;;  %v1411_v43 = vld [vmem:[#allocation2 + $0x8] sm:$0xff] (!%p2509_p8)  ;;  %vm1721_vm7 = vcmask (!%p2509_p8), 1041408   ;;  %vm3174_vm8 = vcmp.lt.s32.totalorder (!%p2509_p8), %v1390_v28, 512 }
 0x2b7   : > { %1399 = vperm.xlu0 (!%p2509_p8), %2627, %v1396_v16   ;;  %1463 = vperm.xlu1 (!%p2509_p8), %2628, %v2513_v22   ;;  %v1573_v14 = vld [vmem:[%s2856_s14] sm:$0xf] (!%p2509_p8)  ;;  %v2517_v1 = vld [vmem:[%s2856_s14 + $0x4] sm:$0xf] (!%p2509_p8) }
 0x2b8   : > { %v3072_v33 = vsub.s32 (!%p2509_p8), %v1389_v31, %v3069_v32  ;;  %v1572_v17 = vld [vmem:[%s2851_s28] sm:$0xf] (!%p2509_p8) }
 0x2bb   : > { %1416 = vperm.xlu0 %2627, %v2510_v23   ;;  %1431 = vperm.xlu1 %2628, %v2511_v24  }
 0x332   : > { %v1386_v34 = vpop.permute.xlu0 %1385  ;;  %v1449_v35 = vpop.permute.xlu1 %1448 }
 0x333   : > { %v1393_v27 = vrot.slane %v1386_v34, %v3072_v33  ;;  %v1456_v41 = vrot.slane %v1449_v35, %v3072_v33 }
 0x335   : > { %v1395_v29 = vmul.f32 %v1393_v27, %v1381_v38 }
 0x336   : > { %v1400_v39 = vpop.permute.xlu0 %1399  ;;  %v1464_v36 = vpop.permute.xlu1 %1463 }
 0x337   : > { %v1407_v40 = vrot.slane %v1400_v39, %v3072_v33  ;;  %v1471_v45 = vrot.slane %v1464_v36, %v3072_v33 }
 0x339   : > { %v1409_v42 = vadd.f32 %v1407_v40, %v1395_v29 }
 0x33a   : > { %v1417_v37 = vpop.permute.xlu0 %1416  ;;  %v1432_v15 = vpop.permute.xlu1 %1431 }
 0x33b   : > { %v1458_v44 = vmul.f32 %v1456_v41, %v1409_v42  ;;  %v1424_v49 = vrot.slane %v1417_v37, %v3072_v33  ;;  %v1439_v6 = vrot.slane %v1432_v15, %v3072_v33  ;;  %v3124_v37 = vsub.s32 6, %v3069_v32 }
 0x33c   : > { %v3127_v15 = vsub.s32 3, %v3069_v32 }
 0x33d   : > { %v3079_v46 = vadd.f32 %v1471_v45, %v1458_v44  ;;  %v1426_v47 = vmul.f32 %v1424_v49, %v1411_v43  ;;  %v3121_v43 = vsub.s32 2, %v3069_v32  ;;  %v3130_v44 = vsub.s32 7, %v3069_v32 }
 0x33f   : > { %v3082_v48 = vadd.f32 %v1439_v6, %v1426_v47  ;;  %v1479_v50 = vcombine.high %v3079_v46, %v3079_v46  ;;  %v1494_v51 = vmul.f32 %v3079_v46, %v3079_v46  ;;  %v1484_v53 = vsel %vm1483_vm5, %v3079_v46, 0.0 }
 0x341   : > { %v1480_v52 = vcombine.high %v3082_v48, %v3082_v48  ;;  %v1485_v54 = vsel %vm1483_vm5, %v1479_v50, 0.0  ;;  %v1495_v55 = vmul.f32 %v3082_v48, %v3082_v48  ;;  %v1498_v59 = vcombine.high %v1494_v51, %v1494_v51 }
 0x342   : > { %v1486_v56 = vadd.f32 %v1485_v54, %v1484_v53  ;;  %v1487_v60 = vsel %vm1483_vm5, %v3082_v48, 0.0  ;;  %v1502_v61 = vsel %vm1483_vm5, %v1494_v51, 0.0 }
 0x343   : > { %v1499_v58 = vcombine.high %v1495_v55, %v1495_v55  ;;  %v1503_v62 = vsel %vm1483_vm5, %v1498_v59, 0.0  ;;  %v1489_v63 = vsel %vm1483_vm5, %v1480_v52, 0.0  ;;  %v1505_v7 = vsel %vm1483_vm5, %v1495_v55, 0.0 }
 0x344   : > { %v1488_v57 = vadd.f32 %v1487_v60, %v1486_v56  ;;  %v1504_v4 = vadd.f32 %v1503_v62, %v1502_v61 }
 0x345   : > { %v1507_v9 = vsel %vm1483_vm5, %v1499_v58, 0.0 }
 0x346   : > { %v1490_v5 = vadd.f32 %v1489_v63, %v1488_v57  ;;  %v1506_v8 = vadd.f32 %v1505_v7, %v1504_v4 }
 0x348   : > { %1491 = vadd.xlane.f32.xlu0 %v1490_v5  ;;  %v1508_v10 = vadd.f32 %v1507_v9, %v1506_v8 }
 0x34a   : > { %1509 = vadd.xlane.f32.xlu1 %v1508_v10 }
 0x35b   : > { %1556 = vperm.xlu1 %2628, %v1553_v11  }
 0x35e   : > { %1541 = vperm.xlu0 %2627, %v1538_v12  }
 0x35f   : > { %1625 = vperm.xlu1 %2628, %v1573_v14  }
 0x362   : > { %1578 = vperm.xlu0 %2627, %v1572_v17  }
 0x363   : > { %1793 = vperm.xlu1 %2628, %v2516_v0  }
 0x366   : > { %2629 = vset.pattern.permute.xlu0 %v2762_v18 }
 0x367   : > { %1633 = vperm.xlu0 %2629, %v1572_v17   ;;  %1840 = vperm.xlu1 %2628, %v2517_v1  }
 0x36b   : > { %1848 = vperm.xlu0 %2629, %v2516_v0   ;;  %2001 = vperm.xlu1 %2628, %v2518_v2  }
 0x36f   : > { %2630 = vset.pattern.permute.xlu0 %v2760_v13  ;;  %2631 = vset.pattern.permute.xlu1 %v2762_v18 }
 0x370   : > { %2048 = vperm.xlu0 %2630, %v2519_v3   ;;  %2056 = vperm.xlu1 %2631, %v2518_v2  }
 0x374   : > { %2632 = vset.pattern.permute.xlu1 %v2760_v13 }
 0x3d5   : > { %v1492_v19 = vpop.xlane.xlu0 %1491 }
 0x3d6   : > { %v1493_v20 = vmul.f32 0.001953125, %v1492_v19 }
 0x3d7   : > { %v1510_v21 = vpop.xlane.xlu1 %1509 }
 0x3d8   : > { %v1512_v30 = vmul.f32 %v1493_v20, %v1493_v20  ;;  %v1511_v16 = vmul.f32 0.001953125, %v1510_v21  ;;  %v1521_v24 = vrot.slane %v1493_v20, %v3072_v33 }
 0x3da   : > { %v1513_v22 = vsub.f32 %v1511_v16, %v1512_v30  ;;  %v1523_v31 = vsub.f32 %v3079_v46, %v1521_v24  ;;  %v1524_v34 = vsub.f32 %v3082_v48, %v1521_v24 }
 0x3db   : > { %v1557_v35 = vpop.permute.xlu1 %1556 }
 0x3dc   : > { %v1525_v23 = vadd.f32 1e-05, %v1513_v22  ;;  %1571 = vst.msk [vmem:[%s2861_s18] sm:$0xf] %vm1570_vm6, %v1513_v22  ;;  %v1564_v36 = vrot.slane %v1557_v35, %v3072_v33 }
 0x3dd   : > { %v1542_v26 = vpop.permute.xlu0 %1541 }
 0x3de   : > { %2635 = vrsqrt.f32 %v1525_v23  ;;  %v1549_v39 = vrot.slane %v1542_v26, %v3072_v33 }
 0x3df   : > { %v1626_v9 = vpop.permute.xlu1 %1625 }
 0x3e1   : > { %v1579_v50 = vpop.permute.xlu0 %1578 }
 0x3e6   : > { %v1634_v8 = vpop.permute.xlu0 %1633 }
 0x3e8   : > { %v2636_v25 = vpop.eup %2635 }
 0x3e9   : > { %v1534_v13 = vrot.slane %v2636_v25, %v3072_v33 }
 0x3eb   : > { %v1536_v27 = vmul.f32 %v1534_v13, %v1523_v31  ;;  %v1537_v38 = vmul.f32 %v1534_v13, %v1524_v34 }
 0x3ed   : > { %v1551_v29 = vmul.f32 %v1549_v39, %v1536_v27  ;;  %v1552_v40 = vmul.f32 %v1549_v39, %v1537_v38 }
 0x3ef   : > { %v1566_v41 = vadd.f32 %v1564_v36, %v1551_v29  ;;  %v1567_v42 = vadd.f32 %v1564_v36, %v1552_v40  ;;  %v2763_v36 = vmov 1966171168  }
 0x3f0   : > { %v1757_v29 = vunpack.c.l.s4 %v2763_v36 }
 0x3f1   : > { %1568 = vst [vmem:[#allocation2] sm:$0xff] %v1566_v41  ;;  %1569 = vst [vmem:[#allocation2 + $0x8] sm:$0xff] %v1567_v42 }
 0x3f8   : > { %v1574_v45 = vld [vmem:[#allocation2] sm:$0xcc]  ;;  %v1575_v49 = vld [vmem:[#allocation2 + $0x8] sm:$0xcc] }
 0x3f9   : > { %v1586_v46 = vrot.slane %v1574_v45, %v3121_v43  ;;  %v1590_v47 = vrot.slane %v1574_v45, %v3124_v37  ;;  %v1594_v6 = vrot.slane %v1575_v49, %v3121_v43  ;;  %v1598_v48 = vrot.slane %v1575_v49, %v3124_v37 }
 0x3fa   : > { %v1639_v51 = vrot.slane %v1574_v45, %v3127_v15  ;;  %v1643_v52 = vrot.slane %v1574_v45, %v3130_v44  ;;  %v1647_v53 = vrot.slane %v1575_v49, %v3127_v15  ;;  %v1651_v54 = vrot.slane %v1575_v49, %v3130_v44 }
 0x3fb   : > { %v1606_v55 = vrot.slane %v1586_v46, %v3121_v43  ;;  %v1610_v56 = vrot.slane %v1590_v47, %v3121_v43  ;;  %v1614_v59 = vrot.slane %v1594_v6, %v3121_v43  ;;  %v1618_v60 = vrot.slane %v1598_v48, %v3121_v43 }
 0x3fc   : > { %v1659_v57 = vrot.slane %v1639_v51, %v3127_v15  ;;  %v1663_v58 = vrot.slane %v1643_v52, %v3127_v15  ;;  %v1667_v61 = vrot.slane %v1647_v53, %v3127_v15  ;;  %v1671_v62 = vrot.slane %v1651_v54, %v3127_v15 }
 0x3fd   : > { %v1619_v63 = vmul.f32 %v1606_v55, %v1579_v50  ;;  %v1620_v4 = vmul.f32 %v1610_v56, %v1579_v50  ;;  %v1621_v5 = vmul.f32 %v1614_v59, %v1579_v50  ;;  %v1622_v7 = vmul.f32 %v1618_v60, %v1579_v50 }
 0x3fe   : > { %v1672_v10 = vmul.f32 %v1659_v57, %v1634_v8  ;;  %v1673_v11 = vmul.f32 %v1663_v58, %v1634_v8  ;;  %v1674_v12 = vmul.f32 %v1667_v61, %v1634_v8  ;;  %v1675_v18 = vmul.f32 %v1671_v62, %v1634_v8 }
 0x3ff   : > { %v1628_v14 = vadd.f32 %v1626_v9, %v1619_v63  ;;  %v1629_v17 = vadd.f32 %v1626_v9, %v1620_v4  ;;  %v1630_v0 = vadd.f32 %v1626_v9, %v1621_v5  ;;  %v1631_v1 = vadd.f32 %v1626_v9, %v1622_v7 }
 0x400   : > { %v1758_v51 = vunpack.c.0.s8 %v1757_v29 }
 0x401   : > { %v3148_v2 = vadd.f32 %v1672_v10, %v1628_v14  ;;  %v3150_v3 = vadd.f32 %v1673_v11, %v1629_v17  ;;  %v3152_v19 = vadd.f32 %v1674_v12, %v1630_v0  ;;  %v3154_v20 = vadd.f32 %v1675_v18, %v1631_v1  ;;  %v1684_v12 = vld [vmem:[#allocation2] sm:$0x33]  ;;  %v1685_v18 = vld [vmem:[#allocation2 + $0x8] sm:$0x33] }
 0x402   : > { %v3167_v63 = vsub.s32 %v1758_v51, %v3069_v32 }
 0x403   : > { %2637 = vtanh.f32 %v3148_v2  ;;  %v1708_v58 = vcombine.low %v3148_v2, %v3150_v3  ;;  %v1709_v9 = vcombine.low %v3152_v19, %v3154_v20 }
 0x404   : > { %2639 = vtanh.f32 %v3150_v3 }
 0x405   : > { %2641 = vtanh.f32 %v3152_v19  ;;  %v2514_v1 = vrot.slane %v1708_v58, 10  ;;  %v1720_v19 = vld [vmem:[#allocation3] sm:$0xf] }
 0x406   : > { %2643 = vtanh.f32 %v3154_v20 }
 0x40d   : > { %v2638_v30 = vpop.eup %2637 }
 0x40e   : > { %v2640_v21 = vpop.eup %2639  ;;  %v1686_v16 = vmul.f32 1.442695, %v2638_v30  ;;  %v1722_v22 = vsel %vm1721_vm7, %v2638_v30, 0.0 }
 0x40f   : > { %v2642_v23 = vpop.eup %2641  ;;  %v1688_v24 = vmul.f32 1.442695, %v2640_v21  ;;  %v1723_v25 = vrot.slane %v1722_v22, 4  ;;  %v1729_v26 = vsel %vm1721_vm7, %v2640_v21, 0.0  ;;  %v2515_v21 = vrot.slane %v1709_v9, 10 }
 0x410   : > { %v2644_v31 = vpop.eup %2643  ;;  %2645 = vpow2.f32 %v1686_v16  ;;  %v1690_v34 = vmul.f32 1.442695, %v2642_v23  ;;  %v1730_v13 = vrot.slane %v1729_v26, 4  ;;  %v1736_v35 = vsel %vm1721_vm7, %v2642_v23, 0.0 }
 0x411   : > { %2647 = vpow2.f32 %v1688_v24  ;;  %v1692_v27 = vmul.f32 1.442695, %v2644_v31  ;;  %v1724_v38 = vadd.f32 %v1723_v25, %v1722_v22  ;;  %v1737_v39 = vrot.slane %v1736_v35, 4 }
 0x412   : > { %2649 = vpow2.f32 %v1690_v34  ;;  %v1731_v40 = vadd.f32 %v1730_v13, %v1729_v26  ;;  %v1743_v41 = vsel %vm1721_vm7, %v2644_v31, 0.0  ;;  %v1800_v26 = vsub.s32 0, %v3069_v32 }
 0x413   : > { %2651 = vpow2.f32 %v1692_v27  ;;  %v1725_v42 = vrot.slane %v1724_v38, 2  ;;  %v1738_v45 = vadd.f32 %v1737_v39, %v1736_v35  ;;  %v1744_v49 = vrot.slane %v1743_v41, 4  ;;  %v1794_v27 = vpop.permute.xlu1 %1793 }
 0x414   : > { %v1732_v46 = vrot.slane %v1731_v40, 2  ;;  %v1804_v31 = vsub.s32 4, %v3069_v32  ;;  %v1853_v34 = vsub.s32 1, %v3069_v32  ;;  %v1857_v13 = vsub.s32 5, %v3069_v32 }
 0x415   : > { %v1726_v47 = vadd.f32 %v1725_v42, %v1724_v38  ;;  %v1739_v6 = vrot.slane %v1738_v45, 2  ;;  %v1745_v48 = vadd.f32 %v1744_v49, %v1743_v41 }
 0x416   : > { %v1733_v50 = vadd.f32 %v1732_v46, %v1731_v40 }
 0x417   : > { %v1727_v52 = vrot.slane %v1726_v47, 1  ;;  %v1740_v53 = vadd.f32 %v1739_v6, %v1738_v45  ;;  %v1746_v54 = vrot.slane %v1745_v48, 2 }
 0x418   : > { %v1734_v55 = vrot.slane %v1733_v50, 1 }
 0x419   : > { %v1728_v56 = vadd.f32 %v1727_v52, %v1726_v47  ;;  %v1741_v59 = vrot.slane %v1740_v53, 1  ;;  %v1747_v60 = vadd.f32 %v1746_v54, %v1745_v48  ;;  %v1841_v54 = vpop.permute.xlu1 %1840 }
 0x41a   : > { %v2646_v57 = vpop.eup %2645  ;;  %v1735_v61 = vadd.f32 %v1734_v55, %v1733_v50 }
 0x41b   : > { %v2648_v62 = vpop.eup %2647  ;;  %v1742_v4 = vadd.f32 %v1741_v59, %v1740_v53  ;;  %v1748_v5 = vrot.slane %v1747_v60, 1  ;;  %v1849_v53 = vpop.permute.xlu0 %1848 }
 0x41c   : > { %v2650_v7 = vpop.eup %2649  ;;  %v1698_v8 = vcombine.low %v2646_v57, %v2648_v62  ;;  %v1754_v10 = vcombine.low %v1728_v56, %v1735_v61 }
 0x41d   : > { %v2652_v11 = vpop.eup %2651  ;;  %v1749_v14 = vadd.f32 %v1748_v5, %v1747_v60 }
 0x41e   : > { %v1699_v17 = vcombine.low %v2650_v7, %v2652_v11  ;;  %v1702_v0 = vmul.f32 %v1698_v8, %v1684_v12  ;;  %v1762_v3 = vrot.slane %v1754_v10, %v3167_v63 }
 0x41f   : > { %v1755_v2 = vcombine.low %v1742_v4, %v1749_v14 }
 0x420   : > { %v1703_v30 = vmul.f32 %v1699_v17, %v1685_v18  ;;  %v1716_v16 = vadd.f32 %v2514_v1, %v1702_v0 }
 0x421   : > { %v1769_v22 = vrot.slane %v1755_v2, %v3167_v63 }
 0x422   : > { %v1717_v23 = vadd.f32 %v2515_v21, %v1703_v30  ;;  %1718 = vst [vmem:[#allocation2] sm:$0x33] %v1716_v16 }
 0x423   : > { %v1770_v24 = vcombine.low %v1762_v3, %v1769_v22 }
 0x424   : > { %1719 = vst [vmem:[#allocation2 + $0x8] sm:$0x33] %v1717_v23 }
 0x425   : > { %v1777_v25 = vrot.slane %v1770_v24, %v3167_v63 }
 0x427   : > { %v1779_v35 = vadd.f32 %v1777_v25, %v1720_v19 }
 0x429   : > { %1784 = vst.msk [vmem:[#allocation3] sm:$0xf] %vm3174_vm8, %v1779_v35  ;;  %v1789_v38 = vld [vmem:[#allocation2] sm:$0x33] }
 0x42a   : > { %v1801_v28 = vrot.slane %v1789_v38, %v1800_v26  ;;  %v1805_v39 = vrot.slane %v1789_v38, %v1804_v31  ;;  %v1854_v36 = vrot.slane %v1789_v38, %v1853_v34  ;;  %v1858_v29 = vrot.slane %v1789_v38, %v1857_v13 }
 0x42b   : > { %v1790_v40 = vld [vmem:[#allocation2 + $0x8] sm:$0x33] }
 0x42c   : > { %v1809_v41 = vrot.slane %v1790_v40, %v1800_v26  ;;  %v1813_v42 = vrot.slane %v1790_v40, %v1804_v31  ;;  %v1821_v45 = vrot.slane %v1801_v28, %v1800_v26  ;;  %v1825_v49 = vrot.slane %v1805_v39, %v1800_v26 }
 0x42d   : > { %v1862_v46 = vrot.slane %v1790_v40, %v1853_v34  ;;  %v1866_v47 = vrot.slane %v1790_v40, %v1857_v13  ;;  %v1874_v6 = vrot.slane %v1854_v36, %v1853_v34  ;;  %v1878_v48 = vrot.slane %v1858_v29, %v1853_v34 }
 0x42e   : > { %v1829_v32 = vrot.slane %v1809_v41, %v1800_v26  ;;  %v1833_v50 = vrot.slane %v1813_v42, %v1800_v26  ;;  %v1834_v51 = vmul.f32 %v1821_v45, %v1794_v27  ;;  %v1835_v52 = vmul.f32 %v1825_v49, %v1794_v27 }
 0x42f   : > { %v1882_v55 = vrot.slane %v1862_v46, %v1853_v34  ;;  %v1886_v56 = vrot.slane %v1866_v47, %v1853_v34  ;;  %v1887_v59 = vmul.f32 %v1874_v6, %v1849_v53  ;;  %v1888_v60 = vmul.f32 %v1878_v48, %v1849_v53 }
 0x430   : > { %v1836_v57 = vmul.f32 %v1829_v32, %v1794_v27  ;;  %v1837_v58 = vmul.f32 %v1833_v50, %v1794_v27  ;;  %v1843_v61 = vadd.f32 %v1841_v54, %v1834_v51  ;;  %v1844_v62 = vadd.f32 %v1841_v54, %v1835_v52 }
 0x431   : > { %v1889_v4 = vmul.f32 %v1882_v55, %v1849_v53  ;;  %v1890_v5 = vmul.f32 %v1886_v56, %v1849_v53 }
 0x432   : > { %v1845_v7 = vadd.f32 %v1841_v54, %v1836_v57  ;;  %v1846_v8 = vadd.f32 %v1841_v54, %v1837_v58  ;;  %v3185_v9 = vadd.f32 %v1887_v59, %v1843_v61  ;;  %v3187_v10 = vadd.f32 %v1888_v60, %v1844_v62  ;;  %v1899_v60 = vld [vmem:[#allocation2] sm:$0xcc] }
 0x434   : > { %v3189_v11 = vadd.f32 %v1889_v4, %v1845_v7  ;;  %v3191_v12 = vadd.f32 %v1890_v5, %v1846_v8  ;;  %2653 = vtanh.f32 %v3185_v9  ;;  %v1925_v4 = vcombine.low %v3185_v9, %v3187_v10  ;;  %v1900_v5 = vld [vmem:[#allocation2 + $0x8] sm:$0xcc]  ;;  %v2002_v9 = vpop.permute.xlu1 %2001 }
 0x435   : > { %2655 = vtanh.f32 %v3187_v10 }
 0x436   : > { %2657 = vtanh.f32 %v3189_v11 }
 0x437   : > { %2659 = vtanh.f32 %v3191_v12 }
 0x43e   : > { %v2654_v14 = vpop.eup %2653 }
 0x43f   : > { %v2656_v17 = vpop.eup %2655  ;;  %v1901_v0 = vmul.f32 1.442695, %v2654_v14  ;;  %v1934_v1 = vsel %vm1721_vm7, %v2654_v14, 0.0  ;;  %v1926_v14 = vcombine.low %v3189_v11, %v3191_v12 }
 0x440   : > { %v2658_v18 = vpop.eup %2657  ;;  %v1903_v2 = vmul.f32 1.442695, %v2656_v17  ;;  %v1935_v3 = vrot.slane %v1934_v1, 4  ;;  %v1941_v30 = vsel %vm1721_vm7, %v2656_v17, 0.0 }
 0x441   : > { %v2660_v21 = vpop.eup %2659  ;;  %2661 = vpow2.f32 %v1901_v0  ;;  %v1905_v16 = vmul.f32 1.442695, %v2658_v18  ;;  %v1942_v22 = vrot.slane %v1941_v30, 4  ;;  %v1948_v23 = vsel %vm1721_vm7, %v2658_v18, 0.0 }
 0x442   : > { %2663 = vpow2.f32 %v1903_v2  ;;  %v1907_v24 = vmul.f32 1.442695, %v2660_v21  ;;  %v1936_v19 = vadd.f32 %v1935_v3, %v1934_v1  ;;  %v1949_v25 = vrot.slane %v1948_v23, 4  ;;  %v1933_v2 = vld [vmem:[#allocation3] sm:$0xf] }
 0x443   : > { %2665 = vpow2.f32 %v1905_v16  ;;  %v1943_v26 = vadd.f32 %v1942_v22, %v1941_v30  ;;  %v1955_v31 = vsel %vm1721_vm7, %v2660_v21, 0.0 }
 0x444   : > { %2667 = vpow2.f32 %v1907_v24  ;;  %v1937_v34 = vrot.slane %v1936_v19, 2  ;;  %v1950_v13 = vadd.f32 %v1949_v25, %v1948_v23  ;;  %v1956_v35 = vrot.slane %v1955_v31, 4  ;;  %v2057_v25 = vpop.permute.xlu1 %2056 }
 0x445   : > { %v1944_v27 = vrot.slane %v1943_v26, 2 }
 0x446   : > { %v1938_v38 = vadd.f32 %v1937_v34, %v1936_v19  ;;  %v1951_v28 = vrot.slane %v1950_v13, 2  ;;  %v1957_v39 = vadd.f32 %v1956_v35, %v1955_v31 }
 0x447   : > { %v1945_v36 = vadd.f32 %v1944_v27, %v1943_v26 }
 0x448   : > { %v1939_v29 = vrot.slane %v1938_v38, 1  ;;  %v1952_v40 = vadd.f32 %v1951_v28, %v1950_v13  ;;  %v1958_v41 = vrot.slane %v1957_v39, 2 }
 0x449   : > { %v1946_v42 = vrot.slane %v1945_v36, 1 }
 0x44a   : > { %v1940_v45 = vadd.f32 %v1939_v29, %v1938_v38  ;;  %v1953_v49 = vrot.slane %v1952_v40, 1  ;;  %v1959_v46 = vadd.f32 %v1958_v41, %v1957_v39  ;;  %v2049_v38 = vpop.permute.xlu0 %2048 }
 0x44b   : > { %v2662_v47 = vpop.eup %2661  ;;  %v1947_v6 = vadd.f32 %v1946_v42, %v1945_v36 }
 0x44c   : > { %v2664_v48 = vpop.eup %2663  ;;  %v1954_v32 = vadd.f32 %v1953_v49, %v1952_v40  ;;  %v1960_v50 = vrot.slane %v1959_v46, 1 }
 0x44d   : > { %v2666_v51 = vpop.eup %2665  ;;  %v1913_v52 = vcombine.low %v2662_v47, %v2664_v48  ;;  %v1966_v53 = vcombine.low %v1940_v45, %v1947_v6 }
 0x44e   : > { %v2668_v54 = vpop.eup %2667  ;;  %v1961_v55 = vadd.f32 %v1960_v50, %v1959_v46 }
 0x44f   : > { %v1914_v56 = vcombine.low %v2666_v51, %v2668_v54  ;;  %v1915_v59 = vrot.slane %v1913_v52, 6  ;;  %v1974_v58 = vrot.slane %v1966_v53, %v3167_v63 }
 0x450   : > { %v1967_v57 = vcombine.low %v1954_v32, %v1961_v55 }
 0x451   : > { %v1916_v61 = vrot.slane %v1914_v56, 6  ;;  %v1919_v62 = vmul.f32 %v1915_v59, %v1899_v60 }
 0x452   : > { %v1981_v7 = vrot.slane %v1967_v57, %v3167_v63 }
 0x453   : > { %v1920_v8 = vmul.f32 %v1916_v61, %v1900_v5  ;;  %v1929_v17 = vadd.f32 %v1925_v4, %v1919_v62 }
 0x454   : > { %v1982_v0 = vcombine.low %v1974_v58, %v1981_v7 }
 0x455   : > { %v1930_v1 = vadd.f32 %v1926_v14, %v1920_v8  ;;  %1931 = vst [vmem:[#allocation2] sm:$0xcc] %v1929_v17 }
 0x456   : > { %v1989_v18 = vrot.slane %v1982_v0, %v3167_v63 }
 0x457   : > { %1932 = vst [vmem:[#allocation2 + $0x8] sm:$0xcc] %v1930_v1 }
 0x458   : > { %v1991_v3 = vadd.f32 %v1989_v18, %v1933_v2 }
 0x45a   : > { %1992 = vst.msk [vmem:[#allocation3] sm:$0xf] %vm3174_vm8, %v1991_v3 }
 0x45c   : > { %v1997_v10 = vld [vmem:[#allocation2] sm:$0xcc] }
 0x45d   : > { %v2062_v30 = vrot.slane %v1997_v10, %v3127_v15  ;;  %v2066_v21 = vrot.slane %v1997_v10, %v3130_v44  ;;  %v2009_v11 = vrot.slane %v1997_v10, %v3121_v43  ;;  %v2013_v12 = vrot.slane %v1997_v10, %v3124_v37 }
 0x45e   : > { %v1998_v16 = vld [vmem:[#allocation2 + $0x8] sm:$0xcc] }
 0x45f   : > { %v2070_v22 = vrot.slane %v1998_v16, %v3127_v15  ;;  %v2074_v23 = vrot.slane %v1998_v16, %v3130_v44  ;;  %v2082_v24 = vrot.slane %v2062_v30, %v3127_v15  ;;  %v2086_v19 = vrot.slane %v2066_v21, %v3127_v15 }
 0x460   : > { %v2017_v26 = vrot.slane %v1998_v16, %v3121_v43  ;;  %v2021_v31 = vrot.slane %v1998_v16, %v3124_v37  ;;  %v2029_v34 = vrot.slane %v2009_v11, %v3121_v43  ;;  %v2033_v13 = vrot.slane %v2013_v12, %v3121_v43 }
 0x461   : > { %v2090_v35 = vrot.slane %v2070_v22, %v3127_v15  ;;  %v2094_v27 = vrot.slane %v2074_v23, %v3127_v15  ;;  %v2095_v29 = vmul.f32 %v2082_v24, %v2057_v25  ;;  %v2096_v40 = vmul.f32 %v2086_v19, %v2057_v25 }
 0x462   : > { %v2037_v44 = vrot.slane %v2017_v26, %v3121_v43  ;;  %v2041_v28 = vrot.slane %v2021_v31, %v3121_v43  ;;  %v2042_v39 = vmul.f32 %v2029_v34, %v2002_v9  ;;  %v2043_v36 = vmul.f32 %v2033_v13, %v2002_v9 }
 0x463   : > { %v2097_v49 = vmul.f32 %v2090_v35, %v2057_v25  ;;  %v2098_v46 = vmul.f32 %v2094_v27, %v2057_v25 }
 0x464   : > { %v2044_v41 = vmul.f32 %v2037_v44, %v2002_v9  ;;  %v2045_v42 = vmul.f32 %v2041_v28, %v2002_v9  ;;  %v2051_v37 = vadd.f32 %v2049_v38, %v2042_v39  ;;  %v2052_v45 = vadd.f32 %v2049_v38, %v2043_v36  ;;  %v2107_v44 = vld [vmem:[#allocation2] sm:$0x33] }
 0x466   : > { %v2053_v47 = vadd.f32 %v2049_v38, %v2044_v41  ;;  %v2054_v6 = vadd.f32 %v2049_v38, %v2045_v42  ;;  %v2099_v48 = vadd.f32 %v2095_v29, %v2051_v37  ;;  %v2100_v32 = vadd.f32 %v2096_v40, %v2052_v45  ;;  %v2108_v40 = vld [vmem:[#allocation2 + $0x8] sm:$0x33] }
 0x468   : > { %v2101_v15 = vadd.f32 %v2097_v49, %v2053_v47  ;;  %v2102_v50 = vadd.f32 %v2098_v46, %v2054_v6  ;;  %2669 = vtanh.f32 %v2099_v48  ;;  %v2131_v24 = vcombine.low %v2099_v48, %v2100_v32 }
 0x469   : > { %2671 = vtanh.f32 %v2100_v32  ;;  %v2143_v32 = vld [vmem:[#allocation3] sm:$0xf] }
 0x46a   : > { %2673 = vtanh.f32 %v2101_v15  ;;  %v2132_v35 = vcombine.low %v2101_v15, %v2102_v50  ;;  %v2520_v29 = vrot.slane %v2131_v24, 10 }
 0x46b   : > { %2675 = vtanh.f32 %v2102_v50 }
 0x46c   : > { %v2521_v45 = vrot.slane %v2132_v35, 10 }
 0x472   : > { %v2670_v43 = vpop.eup %2669 }
 0x473   : > { %v2672_v51 = vpop.eup %2671  ;;  %v2109_v52 = vmul.f32 1.442695, %v2670_v43  ;;  %v2144_v53 = vsel %vm1721_vm7, %v2670_v43, 0.0 }
 0x474   : > { %v2674_v54 = vpop.eup %2673  ;;  %v2111_v55 = vmul.f32 1.442695, %v2672_v51  ;;  %v2145_v56 = vrot.slane %v2144_v53, 4  ;;  %v2151_v59 = vsel %vm1721_vm7, %v2672_v51, 0.0 }
 0x475   : > { %v2676_v60 = vpop.eup %2675  ;;  %2677 = vpow2.f32 %v2109_v52  ;;  %v2113_v57 = vmul.f32 1.442695, %v2674_v54  ;;  %v2152_v58 = vrot.slane %v2151_v59, 4  ;;  %v2158_v61 = vsel %vm1721_vm7, %v2674_v54, 0.0 }
 0x476   : > { %2679 = vpow2.f32 %v2111_v55  ;;  %v2115_v62 = vmul.f32 1.442695, %v2676_v60  ;;  %v2146_v4 = vadd.f32 %v2145_v56, %v2144_v53  ;;  %v2159_v5 = vrot.slane %v2158_v61, 4 }
 0x477   : > { %2681 = vpow2.f32 %v2113_v57  ;;  %v2153_v7 = vadd.f32 %v2152_v58, %v2151_v59  ;;  %v2165_v8 = vsel %vm1721_vm7, %v2676_v60, 0.0 }
 0x478   : > { %2683 = vpow2.f32 %v2115_v62  ;;  %v2147_v14 = vrot.slane %v2146_v4, 2  ;;  %v2160_v17 = vadd.f32 %v2159_v5, %v2158_v61  ;;  %v2166_v0 = vrot.slane %v2165_v8, 4 }
 0x479   : > { %v2154_v1 = vrot.slane %v2153_v7, 2 }
 0x47a   : > { %v2148_v18 = vadd.f32 %v2147_v14, %v2146_v4  ;;  %v2161_v2 = vrot.slane %v2160_v17, 2  ;;  %v2167_v3 = vadd.f32 %v2166_v0, %v2165_v8  ;;  %v2523_v0 = vld [vmem:[%s2836_s19 + $0x4] sm:$0xf] }
 0x47b   : > { %v2155_v9 = vadd.f32 %v2154_v1, %v2153_v7  ;;  %v2522_v1 = vld [vmem:[%s2831_s16 + $0x4] sm:$0xf] }
 0x47c   : > { %v2149_v10 = vrot.slane %v2148_v18, 1  ;;  %v2162_v30 = vadd.f32 %v2161_v2, %v2160_v17  ;;  %v2168_v21 = vrot.slane %v2167_v3, 2 }
 0x47d   : > { %v2156_v11 = vrot.slane %v2155_v9, 1 }
 0x47e   : > { %v2150_v12 = vadd.f32 %v2149_v10, %v2148_v18  ;;  %v2163_v16 = vrot.slane %v2162_v30, 1  ;;  %v2169_v22 = vadd.f32 %v2168_v21, %v2167_v3 }
 0x47f   : > { %v2678_v23 = vpop.eup %2677  ;;  %v2157_v19 = vadd.f32 %v2156_v11, %v2155_v9 }
 0x480   : > { %v2680_v25 = vpop.eup %2679  ;;  %v2164_v26 = vadd.f32 %v2163_v16, %v2162_v30  ;;  %v2170_v31 = vrot.slane %v2169_v22, 1 }
 0x481   : > { %v2682_v34 = vpop.eup %2681  ;;  %v2121_v13 = vcombine.low %v2678_v23, %v2680_v25  ;;  %v2176_v27 = vcombine.low %v2150_v12, %v2157_v19 }
 0x482   : > { %v2684_v38 = vpop.eup %2683  ;;  %v2171_v28 = vadd.f32 %v2170_v31, %v2169_v22 }
 0x483   : > { %v2122_v39 = vcombine.low %v2682_v34, %v2684_v38  ;;  %v2125_v36 = vmul.f32 %v2121_v13, %v2107_v44  ;;  %v2184_v42 = vrot.slane %v2176_v27, %v3167_v63 }
 0x484   : > { %v2177_v41 = vcombine.low %v2164_v26, %v2171_v28 }
 0x485   : > { %v2126_v37 = vmul.f32 %v2122_v39, %v2108_v40  ;;  %v2139_v49 = vadd.f32 %v2520_v29, %v2125_v36 }
 0x486   : > { %v2191_v46 = vrot.slane %v2177_v41, %v3167_v63 }
 0x487   : > { %v2140_v47 = vadd.f32 %v2521_v45, %v2126_v37  ;;  %2141 = vst [vmem:[#allocation2] sm:$0x33] %v2139_v49 }
 0x488   : > { %v2192_v6 = vcombine.low %v2184_v42, %v2191_v46 }
 0x489   : > { %2142 = vst [vmem:[#allocation2 + $0x8] sm:$0x33] %v2140_v47 }
 0x48a   : > { %v2199_v48 = vrot.slane %v2192_v6, %v3167_v63 }
 0x48c   : > { %v2201_v15 = vadd.f32 %v2199_v48, %v2143_v32 }
 0x48e   : > { %2202 = vst.msk [vmem:[#allocation3] sm:$0xf] %vm3174_vm8, %v2201_v15  ;;  %v2203_v50 = vld [vmem:[#allocation2] sm:$0xff] }
 0x48f   : > { %v2207_v43 = vcombine.high %v2203_v50, %v2203_v50  ;;  %v2221_v51 = vmul.f32 %v2203_v50, %v2203_v50  ;;  %v2211_v54 = vsel %vm1483_vm5, %v2203_v50, 0.0 }
 0x490   : > { %v2204_v52 = vld [vmem:[#allocation2 + $0x8] sm:$0xff] }
 0x491   : > { %v2208_v53 = vcombine.high %v2204_v52, %v2204_v52  ;;  %v2212_v55 = vsel %vm1483_vm5, %v2207_v43, 0.0  ;;  %v2222_v56 = vmul.f32 %v2204_v52, %v2204_v52  ;;  %v2225_v60 = vcombine.high %v2221_v51, %v2221_v51 }
 0x492   : > { %v2213_v59 = vadd.f32 %v2212_v55, %v2211_v54  ;;  %v2214_v63 = vsel %vm1483_vm5, %v2204_v52, 0.0  ;;  %v2229_v20 = vsel %vm1483_vm5, %v2221_v51, 0.0 }
 0x493   : > { %v2226_v58 = vcombine.high %v2222_v56, %v2222_v56  ;;  %v2230_v61 = vsel %vm1483_vm5, %v2225_v60, 0.0  ;;  %v2216_v62 = vsel %vm1483_vm5, %v2208_v53, 0.0  ;;  %v2232_v7 = vsel %vm1483_vm5, %v2222_v56, 0.0 }
 0x494   : > { %v2215_v57 = vadd.f32 %v2214_v63, %v2213_v59  ;;  %v2231_v4 = vadd.f32 %v2230_v61, %v2229_v20 }
 0x495   : > { %v2234_v14 = vsel %vm1483_vm5, %v2226_v58, 0.0 }
 0x496   : > { %v2217_v5 = vadd.f32 %v2216_v62, %v2215_v57  ;;  %v2233_v8 = vadd.f32 %v2232_v7, %v2231_v4 }
 0x498   : > { %2218 = vadd.xlane.f32.xlu1 %v2217_v5  ;;  %v2235_v17 = vadd.f32 %v2234_v14, %v2233_v8 }
 0x49a   : > { %2236 = vadd.xlane.f32.xlu0 %v2235_v17 }
 0x4a9   : > { %2285 = vperm.xlu1 %2632, %v2523_v0  }
 0x4b0   : > { %2269 = vperm.xlu0 %2630, %v2522_v1  }
 0x525   : > { %v2219_v18 = vpop.xlane.xlu1 %2218 }
 0x526   : > { %v2220_v2 = vmul.f32 0.001953125, %v2219_v18 }
 0x527   : > { %v2237_v9 = vpop.xlane.xlu0 %2236 }
 0x528   : > { %v2239_v3 = vmul.f32 %v2220_v2, %v2220_v2  ;;  %v2238_v10 = vmul.f32 0.001953125, %v2237_v9  ;;  %v2248_v11 = vrot.slane %v2220_v2, %v3072_v33 }
 0x529   : > { %v2286_v22 = vpop.permute.xlu1 %2285 }
 0x52a   : > { %v2240_v30 = vsub.f32 %v2238_v10, %v2239_v3  ;;  %v2250_v23 = vsub.f32 %v2203_v50, %v2248_v11  ;;  %v2251_v24 = vsub.f32 %v2204_v52, %v2248_v11  ;;  %v2293_v34 = vrot.slane %v2286_v22, %v3072_v33 }
 0x52c   : > { %v2252_v21 = vadd.f32 1e-05, %v2240_v30  ;;  %2524 = vst.msk [vmem:[%s2861_s18 + $0x4] sm:$0xf] %vm1570_vm6, %v2240_v30 }
 0x52e   : > { %2685 = vrsqrt.f32 %v2252_v21 }
 0x52f   : > { %v2270_v16 = vpop.permute.xlu0 %2269 }
 0x530   : > { %v2277_v31 = vrot.slane %v2270_v16, %v3072_v33 }
 0x538   : > { %v2686_v12 = vpop.eup %2685 }
 0x539   : > { %v2261_v19 = vrot.slane %v2686_v12, %v3072_v33 }
 0x53b   : > { %v2263_v25 = vmul.f32 %v2261_v19, %v2250_v23  ;;  %v2264_v26 = vmul.f32 %v2261_v19, %v2251_v24 }
 0x53d   : > { %v2279_v13 = vmul.f32 %v2277_v31, %v2263_v25  ;;  %v2280_v35 = vmul.f32 %v2277_v31, %v2264_v26 }
 0x53f   : > { %v2295_v27 = vadd.f32 %v2293_v34, %v2279_v13  ;;  %v2296_v38 = vadd.f32 %v2293_v34, %v2280_v35 }
 0x541   : > { %2297 = vst [vmem:[#allocation2] sm:$0xff] %v2295_v27  ;;  %2298 = vst [vmem:[#allocation2 + $0x8] sm:$0xff] %v2296_v38 }
 0x542 PF: > { %p2525_p9 = scmp.ne.s32.totalorder %s2822_s10, 1 }
 0x543   : > { %v2309_v39 = vld [vmem:[#allocation3] sm:$0xf] (!%p2525_p9)  ;;  %v2310_v36 = vlaneseq (!%p2525_p9) }
 0x544   : > { %2304 = sbr.rel (%p2525_p9) target bundleno = 1355 (0x54b), region = 64 }
 0x545   : > { %vm2312_vm9 = vcmp.lt.s32.totalorder (!%p2525_p9), %v2310_v36, 512 }
 0x546   : > { %2314 = vst.msk [vmem:[#allocation6] sm:$0xf] (!%p2525_p9), %vm2312_vm9, %v2309_v39 }
 0x548   : > { %v2305_v44 = vld [vmem:[#allocation2] sm:$0xff] (!%p2525_p9)  ;;  %v2306_v28 = vld [vmem:[#allocation2 + $0x8] sm:$0xff] (!%p2525_p9) }
 0x549   : > { %2307 = vst [vmem:[#allocation4] sm:$0xff] (!%p2525_p9), %v2305_v44  ;;  %2308 = vst [vmem:[#allocation4 + $0x8] sm:$0xff] (!%p2525_p9), %v2306_v28 }
 0x54b PF: > { %p2544_p10 = scmp.eq.s32.totalorder %s2822_s10, 1  ;;  %s2764_s16 = smov [#allocation4]  }
 0x54c   : > { %s2327_s19 = sshll.u32 %s2764_s16, 4  ;;  %s2765_s22 = smov [#allocation6]   ;;  %s2328_s19 = int_to_ptr.vmem [resolvable:$true] %s2327_s19 }
 0x54d   : > { %s2338_s25 = sshll.u32 %s2765_s22, 4  ;;  %s2687_s28 = scalar_lea.vmem %s2328_s19, 256  ;;  %s2339_s25 = int_to_ptr.vmem [resolvable:$true] %s2338_s25 }
 0x54e   : > { %p2688_p11 = scmp.ne.s32.totalorder %s2328_s19, %s2687_s28  ;;  %p2694_p0 = scmp.lt.s32.totalorder %s2328_s19, %s2328_s19 }
 0x54f   : > { %p2695_p1 = scmp.lt.s32.totalorder %s2687_s28, %s2687_s28 }
 0x550   : > { %p2689_p12 = pnand %p2688_p11, %p2544_p10 }
 0x551   : > { %p2696_p2 = por %p2695_p1, %p2694_p0 }
 0x552   : > { %p2690_p13 = pneg %p2689_p12 }
 0x554   : > { %p2697_p3 = pnand %p2696_p2, %p2690_p13 }
 0x556   : > { %2700 = shalt.err (!%p2697_p3)
}
 0x557   : > { %s2701_s15 = scalar_lea.hbm %s3307_s7, 256 }
 0x558   : > { %p2702_p4 = scmp.ne.s32.totalorder %s3307_s7, %s2701_s15  ;;  %p2707_p7 = scmp.lt.u32.totalorder %s2701_s15, %s3307_s7 }
 0x55a   : > { %p2703_p5 = pnand %p2702_p4, %p2544_p10 }
 0x55c   : > { %p2704_p6 = pneg %p2703_p5 }
 0x55e   : > { %p2709_p8 = pnand %p2707_p7, %p2704_p6 }
 0x560   : > { %2712 = shalt.err (!%p2709_p8)
}
 0x561   : > { %2537 = dma.vmem_to_hbm [thread:$0]  (%p2544_p10), %s2328_s19, 256, %s3307_s7, [#allocation5]  }
 0x562   : > { %s2713_s12 = scalar_lea.vmem %s2339_s25, 64  ;;  %p2720_p13 = scmp.lt.s32.totalorder %s2339_s25, %s2339_s25 }
 0x563   : > { %p2714_p9 = scmp.ne.s32.totalorder %s2339_s25, %s2713_s12  ;;  %p2721_p0 = scmp.lt.s32.totalorder %s2713_s12, %s2713_s12 }
 0x565   : > { %p2715_p11 = pnand %p2714_p9, %p2544_p10  ;;  %p2722_p1 = por %p2721_p0, %p2720_p13 }
 0x567   : > { %p2716_p12 = pneg %p2715_p11 }
 0x569   : > { %p2723_p2 = pnand %p2722_p1, %p2716_p12 }
 0x56b   : > { %2726 = shalt.err (!%p2723_p2)
}
 0x56c   : > { %s2727_s27 = scalar_lea.hbm %s3308_s8, 64 }
 0x56d   : > { %p2728_p3 = scmp.ne.s32.totalorder %s3308_s8, %s2727_s27  ;;  %p2733_p6 = scmp.lt.u32.totalorder %s2727_s27, %s3308_s8 }
 0x56f   : > { %p2729_p4 = pnand %p2728_p3, %p2544_p10 }
 0x571   : > { %p2730_p5 = pneg %p2729_p4 }
 0x573   : > { %p2735_p7 = pnand %p2733_p6, %p2730_p5 }
 0x575   : > { %2738 = shalt.err (!%p2735_p7)
}
 0x576   : > { %2539 = dma.vmem_to_hbm [thread:$0]  (%p2544_p10), %s2339_s25, 64, %s3308_s8, [#allocation7]  }
 0x577   : > { %2744 = dma.done.wait (%p2544_p10), [#allocation5], 256  }
 0x578   : > { %2746 = vsyncadd (%p2544_p10), [#allocation5], 4294967040 }
 0x579   : > { %2748 = dma.done.wait (%p2544_p10), [#allocation7], 64  }
 0x57a   : > { %2750 = vsyncadd (%p2544_p10), [#allocation7], 4294967232 }
 0x57b PF: > { %s22_s30 = sadd.s32 1, %s2753_s30  }
 0x57c   : > { %p19_p8 = scmp.ge.s32.totalorder %s22_s30, 4  }
 0x57e   :  { %21 = sbr.rel (!%p19_p8) target bundleno = 2 (0x2), region = 148 }
 0x585   :  { %2366 = vsyncpa [#allocation5], 1 }
 0x586   :  { %2368 = vsyncpa [#allocation5 + $0x1], 1 }
 0x587   :  { %2369 = vsyncpa [#allocation7], 1 }

</bundles_post_ra>
